<compile_context>
chip_gen: v5e
topology: v5e:2x2
jax: 0.10.0
libtpu: 0.0.40
codegen_flags: <defaults>
</compile_context>

<pallas_src>
import jax
import jax.numpy as jnp
from jax.experimental import pallas as pl
from jax.experimental.pallas import tpu as pltpu

FEAT = 2048  # ResNet50 feature dimension (input dim of self.proj)


def _pick_image_tile(bn, c, max_tb=8):
    """Images per grid step.  Require (tb*C) % 8 == 0 so the (tb*C, HW) x
    block is sublane-dense/legal, prefer >= 2 grid steps on the parallel axis
    (both v7x TensorCores get work), prefer larger tb (amortizes per-step
    overhead, bigger M for the projection GEMM)."""
    cands = [t for t in range(1, min(max_tb, bn) + 1)
             if bn % t == 0 and (t * c) % 8 == 0]
    if cands:
        with_split = [t for t in cands if bn // t >= 2]
        return max(with_split) if with_split else max(cands)
    # Fallback: one tile spanning the full image axis (block == full dim is
    # always layout-legal).
    return bn


def _pick_hw_tile(hw, max_thw=512):
    """HW chunk so the live (thw, tf) f32 intermediate stays bounded
    (<= ~1 MiB at tf=512).  Prefer multiples of 8 for clean sublane tiles."""
    if hw <= max_thw:
        return hw
    for t in range(max_thw, 0, -1):
        if hw % t == 0 and t % 8 == 0:
            return t
    for t in range(max_thw, 0, -1):
        if hw % t == 0:
            return t
    return hw


def _make_kernel(tb, c, hw, thw, tf):
    n_hw = hw // thw
    inv_hw = 1.0 / float(hw)
    unroll_hw = True if n_hw <= 4 else None   # short fixed loops: give LLO visibility

    def kernel(x_ref, wc_ref, bc_ref, wp_ref, bp_ref, o_ref, pooled_ref, acc_ref):
        f = pl.program_id(1)

        @pl.when(f == 0)
        def _init():
            acc_ref[...] = jnp.zeros_like(acc_ref)

        # Resident weights: slice this FEAT chunk in-kernel (chunk-aligned).
        col = pl.multiple_of(f * tf, tf)
        wc = wc_ref[:, pl.ds(col, tf)]            # (C, tf)  f32, hoisted
        bc = bc_ref[:, pl.ds(col, tf)]            # (1, tf)  f32, hoisted

        # Fused 1x1-conv + ReLU + sum-pool over HW for this FEAT chunk.
        for b in range(tb):                       # short static loop, tb <= 8
            row = b * c                           # static sublane offset

            def hw_body(k, psum):
                start = pl.multiple_of(k * thw, thw)
                xs = x_ref[pl.ds(row, c), pl.ds(start, thw)]          # (C, thw) f32
                # trans-A matmul on the MXU: x_chunk^T @ W -> (thw, tf), f32 acc.
                # (K = C is tiny, so the MXU is underfed but still the cheapest
                #  way to realize the C->tf transpose+contract; VPU work —
                #  bias + ReLU + reduce — dominates this loop.)
                h = jax.lax.dot_general(
                    xs, wc, (((0,), (0,)), ((), ())),
                    preferred_element_type=jnp.float32)               # (thw, tf)
                h = jnp.maximum(h + bc, 0.0)                          # bias + ReLU
                return psum + jnp.sum(h, axis=0, keepdims=True)       # sum-pool

            psum = jax.lax.fori_loop(0, n_hw, hw_body,
                                     jnp.zeros((1, tf), jnp.float32),
                                     unroll=unroll_hw)
            pooled_ref[pl.ds(b, 1), :] = psum     # straight to scratch, no concatenate

        # Projection contribution of this FEAT chunk; pooled stays f32
        # (sum of up to HW positive terms — keep full mantissa).
        acc_ref[...] += jnp.dot(pooled_ref[...], wp_ref[pl.ds(col, tf), :],
                                preferred_element_type=jnp.float32)

        @pl.when(f == pl.num_programs(1) - 1)
        def _finalize():
            # mean-pool scale (1/HW) and proj bias applied exactly once.
            o_ref[0] = acc_ref[...] * inv_hw + bp_ref[...]

    return kernel


def image_feature_extractor(x, w_conv, b_conv, w_proj, b_proj,
                            *, feat_tile=512, hw_tile=512):
    """x: [B, num_images, C, H, W] float32 (NCHW) -> [B, num_images, hidden]."""
    B, N, C, H, W = x.shape
    BN, HW = B * N, H * W
    feat = w_conv.shape[1]
    hidden = w_proj.shape[1]
    hidden_pad = max(128, ((hidden + 127) // 128) * 128)   # lane-dense output

    tb = _pick_image_tile(BN, C)
    gi = BN // tb
    tf = feat_tile if feat % feat_tile == 0 else feat
    gf = feat // tf
    thw = _pick_hw_tile(HW, hw_tile)

    # NCHW -> [BN*C, HW]: pure contiguous reshape; stays f32 (no extra HBM
    # round trip for a bf16 cast — the conv GEMM is not MXU-bound at K=C).
    x2d = x.reshape(BN * C, HW).astype(jnp.float32)
    wc = w_conv.astype(jnp.float32)                                     # (C, FEAT)
    bc = b_conv.reshape(1, feat).astype(jnp.float32)                    # (1, FEAT)
    wp = jnp.zeros((feat, hidden_pad), jnp.float32).at[:, :hidden].set(
        w_proj.astype(jnp.float32))                                     # (FEAT, Hp)
    bp = jnp.zeros((1, hidden_pad), jnp.float32).at[:, :hidden].set(
        b_proj.reshape(1, hidden).astype(jnp.float32))                  # (1, Hp)

    kernel = _make_kernel(tb, C, HW, thw, tf)

    out = pl.pallas_call(
        kernel,
        out_shape=jax.ShapeDtypeStruct((gi, tb, hidden_pad), jnp.float32),
        grid_spec=pltpu.PrefetchScalarGridSpec(
            num_scalar_prefetch=0,
            grid=(gi, gf),                          # images parallel, FEAT reduce
            in_specs=[
                # x tile: sublane-dense rows, fetched once per image tile
                pl.BlockSpec((tb * C, HW), lambda i, f: (i, 0)),
                # weights / biases: constant block index -> VMEM-resident
                pl.BlockSpec((C, feat), lambda i, f: (0, 0)),
                pl.BlockSpec((1, feat), lambda i, f: (0, 0)),
                pl.BlockSpec((feat, hidden_pad), lambda i, f: (0, 0)),
                pl.BlockSpec((1, hidden_pad), lambda i, f: (0, 0)),
            ],
            out_specs=pl.BlockSpec((1, tb, hidden_pad), lambda i, f: (i, 0, 0)),
            scratch_shapes=[pltpu.VMEM((tb, tf), jnp.float32),        # pooled chunk
                            pltpu.VMEM((tb, hidden_pad), jnp.float32)],  # proj acc
        ),
        compiler_params=pltpu.CompilerParams(
            dimension_semantics=("parallel", "arbitrary"),
            vmem_limit_bytes=48 * 1024 * 1024),     # safe on v7x (64 MiB), roomy on v5e/v6e
    )(x2d, wc, bc, wp, bp)

    return out.reshape(BN, hidden_pad)[:, :hidden].reshape(B, N, hidden)


def init_params(key, in_channels, hidden):
    """Deterministic synthetic parameters (shapes implied by the module)."""
    k1, k2, k3, k4 = jax.random.split(key, 4)
    w_conv = jax.random.normal(k1, (in_channels, FEAT), jnp.float32) * 0.05
    b_conv = jax.random.normal(k2, (1, FEAT), jnp.float32) * 0.01
    # self.proj = nn.Linear(2048, hidden_size)
    w_proj = jax.random.normal(k3, (FEAT, hidden), jnp.float32) * (FEAT ** -0.5)
    b_proj = jax.random.normal(k4, (1, hidden), jnp.float32) * 0.01
    return w_conv, b_conv, w_proj, b_proj


if __name__ == "__main__":
    B, N, C, H, W = 2, 2, 4, 16, 16
    hidden = 32

    key = jax.random.PRNGKey(0)
    kx, kp = jax.random.split(key)
    x = jax.random.normal(kx, (B, N, C, H, W), jnp.float32)
    w_conv, b_conv, w_proj, b_proj = init_params(kp, C, hidden)

    out = image_feature_extractor(x, w_conv, b_conv, w_proj, b_proj)
    out = jax.block_until_ready(out)
    assert out.shape == (B, N, hidden), out.shape

    # pure-JAX f32 reference of the same forward pass
    BN, HW = B * N, H * W
    xr = x.reshape(BN, C, HW)
    h = jnp.maximum(
        jnp.einsum("bct,cf->btf", xr, w_conv, precision="highest") + b_conv, 0.0)
    pooled = jnp.mean(h, axis=1)                                    # (BN, FEAT)
    ref = (jnp.dot(pooled, w_proj, precision="highest") + b_proj).reshape(B, N, hidden)
    err = float(jnp.max(jnp.abs(out - ref)))
    assert jnp.allclose(out, ref, atol=2e-3, rtol=2e-3), err

    print("KERNEL_OK")
</pallas_src>

<mosaic_0001>
module attributes {stable_mosaic.version = 11 : i64} {
  func.func @kernel(%arg0: i32, %arg1: i32, %arg2: memref<8x256xf32, #tpu.memory_space<vmem>>, %arg3: memref<4x2048xf32, #tpu.memory_space<vmem>>, %arg4: memref<1x2048xf32, #tpu.memory_space<vmem>>, %arg5: memref<2048x128xf32, #tpu.memory_space<vmem>>, %arg6: memref<1x128xf32, #tpu.memory_space<vmem>>, %arg7: memref<1x2x128xf32, #tpu.memory_space<vmem>>, %arg8: memref<2x512xf32, #tpu.memory_space<vmem>>, %arg9: memref<2x128xf32, #tpu.memory_space<vmem>>) attributes {dimension_semantics = [#tpu.dimension_semantics<parallel>, #tpu.dimension_semantics<arbitrary>], iteration_bounds = array<i64: 2, 4>, scalar_prefetch = 0 : i64, scratch_operands = 2 : i64, tpu.core_type = #tpu.core_type<tc>, window_params = [{transform_indices = @transform_0, window_bounds = array<i64: 8, 256>}, {pipeline_mode = #tpu.pipeline_mode<synchronous>, transform_indices = @transform_1, window_bounds = array<i64: 4, 2048>}, {pipeline_mode = #tpu.pipeline_mode<synchronous>, transform_indices = @transform_2, window_bounds = array<i64: 1, 2048>}, {pipeline_mode = #tpu.pipeline_mode<synchronous>, transform_indices = @transform_3, window_bounds = array<i64: 2048, 128>}, {pipeline_mode = #tpu.pipeline_mode<synchronous>, transform_indices = @transform_4, window_bounds = array<i64: 1, 128>}, {transform_indices = @transform_5, window_bounds = array<i64: 1, 2, 128>}]} {
    %c0_i32 = arith.constant 0 : i32
    %0 = arith.cmpi eq, %arg1, %c0_i32 : i32
    %1 = arith.extui %0 : i1 to i32
    %c0_i32_0 = arith.constant 0 : i32
    %2 = arith.cmpi ne, %1, %c0_i32_0 : i32
    scf.if %2 {
      %cst_26 = arith.constant 0.000000e+00 : f32
      %47 = vector.broadcast %cst_26 : f32 to vector<2x128xf32>
      %c0_27 = arith.constant 0 : index
      %c0_28 = arith.constant 0 : index
      %48 = vector.load %arg9[%c0_27, %c0_28] : memref<2x128xf32, #tpu.memory_space<vmem>>, vector<2x128xf32>
      tpu.vector_store %arg9[%c0_27, %c0_28], %47 {strides = array<i32>} : memref<2x128xf32, #tpu.memory_space<vmem>>, vector<2x128xf32>,
    } else {
    }
    %c512_i32 = arith.constant 512 : i32
    %3 = arith.muli %arg1, %c512_i32 : i32
    %4 = tpu.assume_multiple %3, 512 : i32
    %c0 = arith.constant 0 : index
    %5 = arith.index_cast %4 : i32 to index
    %6 = vector.load %arg3[%c0, %5] : memref<4x2048xf32, #tpu.memory_space<vmem>>, vector<4x512xf32>
    %c0_1 = arith.constant 0 : index
    %7 = arith.index_cast %4 : i32 to index
    %8 = vector.load %arg4[%c0_1, %7] : memref<1x2048xf32, #tpu.memory_space<vmem>>, vector<1x512xf32>
    %cst = arith.constant 0.000000e+00 : f32
    %9 = vector.broadcast %cst : f32 to vector<1x512xf32>
    %c0_i32_2 = arith.constant 0 : i32
    %c256_i32 = arith.constant 256 : i32
    %10 = arith.muli %c0_i32_2, %c256_i32 : i32
    %11 = tpu.assume_multiple %10, 256 : i32
    %c0_3 = arith.constant 0 : index
    %12 = arith.index_cast %11 : i32 to index
    %13 = vector.load %arg2[%c0_3, %12] : memref<8x256xf32, #tpu.memory_space<vmem>>, vector<4x256xf32>
    %cst_4 = arith.constant dense<0.000000e+00> : vector<256x512xf32>
    %14 = tpu.matmul %13, %6, %cst_4 {dimension_numbers = #tpu.dot_dimension_numbers<[0], [0], [1], [1], [0, 1, 1, 1], [], []>} : vector<4x256xf32>, vector<4x512xf32>, vector<256x512xf32> -> vector<256x512xf32>
    %15 = vector.broadcast %8 : vector<1x512xf32> to vector<256x512xf32>
    %16 = arith.addf %14, %15 : vector<256x512xf32>
    %cst_5 = arith.constant 0.000000e+00 : f32
    %17 = vector.broadcast %cst_5 : f32 to vector<256x512xf32>
    %18 = arith.maximumf %16, %17 : vector<256x512xf32>
    %cst_6 = arith.constant dense<0.000000e+00> : vector<512xf32>
    %19 = vector.multi_reduction <add>, %18, %cst_6 [0] : vector<256x512xf32> to vector<512xf32>
    %20 = vector.shape_cast %19 : vector<512xf32> to vector<1x512xf32>
    %21 = arith.addf %9, %20 : vector<1x512xf32>
    %c1_i32 = arith.constant 1 : i32
    %c0_7 = arith.constant 0 : index
    %c0_8 = arith.constant 0 : index
    %22 = vector.load %arg8[%c0_7, %c0_8] : memref<2x512xf32, #tpu.memory_space<vmem>>, vector<1x512xf32>
    tpu.vector_store %arg8[%c0_7, %c0_8], %21 {strides = array<i32>} : memref<2x512xf32, #tpu.memory_space<vmem>>, vector<1x512xf32>,
    %cst_9 = arith.constant 0.000000e+00 : f32
    %23 = vector.broadcast %cst_9 : f32 to vector<1x512xf32>
    %c0_i32_10 = arith.constant 0 : i32
    %c256_i32_11 = arith.constant 256 : i32
    %24 = arith.muli %c0_i32_10, %c256_i32_11 : i32
    %25 = tpu.assume_multiple %24, 256 : i32
    %c4 = arith.constant 4 : index
    %26 = arith.index_cast %25 : i32 to index
    %27 = vector.load %arg2[%c4, %26] : memref<8x256xf32, #tpu.memory_space<vmem>>, vector<4x256xf32>
    %cst_12 = arith.constant dense<0.000000e+00> : vector<256x512xf32>
    %28 = tpu.matmul %27, %6, %cst_12 {dimension_numbers = #tpu.dot_dimension_numbers<[0], [0], [1], [1], [0, 1, 1, 1], [], []>} : vector<4x256xf32>, vector<4x512xf32>, vector<256x512xf32> -> vector<256x512xf32>
    %29 = vector.broadcast %8 : vector<1x512xf32> to vector<256x512xf32>
    %30 = arith.addf %28, %29 : vector<256x512xf32>
    %cst_13 = arith.constant 0.000000e+00 : f32
    %31 = vector.broadcast %cst_13 : f32 to vector<256x512xf32>
    %32 = arith.maximumf %30, %31 : vector<256x512xf32>
    %cst_14 = arith.constant dense<0.000000e+00> : vector<512xf32>
    %33 = vector.multi_reduction <add>, %32, %cst_14 [0] : vector<256x512xf32> to vector<512xf32>
    %34 = vector.shape_cast %33 : vector<512xf32> to vector<1x512xf32>
    %35 = arith.addf %23, %34 : vector<1x512xf32>
    %c1_i32_15 = arith.constant 1 : i32
    %c1 = arith.constant 1 : index
    %c0_16 = arith.constant 0 : index
    %36 = vector.load %arg8[%c1, %c0_16] : memref<2x512xf32, #tpu.memory_space<vmem>>, vector<1x512xf32>
    tpu.vector_store %arg8[%c1, %c0_16], %35 {strides = array<i32>} : memref<2x512xf32, #tpu.memory_space<vmem>>, vector<1x512xf32>,
    %c0_17 = arith.constant 0 : index
    %c0_18 = arith.constant 0 : index
    %37 = vector.load %arg9[%c0_17, %c0_18] : memref<2x128xf32, #tpu.memory_space<vmem>>, vector<2x128xf32>
    %c0_19 = arith.constant 0 : index
    %c0_20 = arith.constant 0 : index
    %38 = vector.load %arg8[%c0_19, %c0_20] : memref<2x512xf32, #tpu.memory_space<vmem>>, vector<2x512xf32>
    %39 = arith.index_cast %4 : i32 to index
    %c0_21 = arith.constant 0 : index
    %40 = vector.load %arg5[%39, %c0_21] : memref<2048x128xf32, #tpu.memory_space<vmem>>, vector<512x128xf32>
    %cst_22 = arith.constant dense<0.000000e+00> : vector<2x128xf32>
    %41 = tpu.matmul %38, %40, %cst_22 {dimension_numbers = #tpu.dot_dimension_numbers<[1], [0], [0], [1], [0, 0, 1, 1], [], []>} : vector<2x512xf32>, vector<512x128xf32>, vector<2x128xf32> -> vector<2x128xf32>
    %42 = arith.addf %37, %41 : vector<2x128xf32>
    %c0_23 = arith.constant 0 : index
    %c0_24 = arith.constant 0 : index
    %43 = vector.load %arg9[%c0_23, %c0_24] : memref<2x128xf32, #tpu.memory_space<vmem>>, vector<2x128xf32>
    tpu.vector_store %arg9[%c0_23, %c0_24], %42 {strides = array<i32>} : memref<2x128xf32, #tpu.memory_space<vmem>>, vector<2x128xf32>,
    %c3_i32 = arith.constant 3 : i32
    %44 = arith.cmpi eq, %arg1, %c3_i32 : i32
    %45 = arith.extui %44 : i1 to i32
    %c0_i32_25 = arith.constant 0 : i32
    %46 = arith.cmpi ne, %45, %c0_i32_25 : i32
    scf.if %46 {
      %c0_26 = arith.constant 0 : index
      %c0_27 = arith.constant 0 : index
      %47 = vector.load %arg9[%c0_26, %c0_27] : memref<2x128xf32, #tpu.memory_space<vmem>>, vector<2x128xf32>
      %cst_28 = arith.constant 3.906250e-03 : f32
      %48 = vector.broadcast %cst_28 : f32 to vector<2x128xf32>
      %49 = arith.mulf %47, %48 : vector<2x128xf32>
      %c0_29 = arith.constant 0 : index
      %c0_30 = arith.constant 0 : index
      %50 = vector.load %arg6[%c0_29, %c0_30] : memref<1x128xf32, #tpu.memory_space<vmem>>, vector<1x128xf32>
      %51 = vector.broadcast %50 : vector<1x128xf32> to vector<2x128xf32>
      %52 = arith.addf %49, %51 : vector<2x128xf32>
      %c0_31 = arith.constant 0 : index
      %c0_32 = arith.constant 0 : index
      %c0_33 = arith.constant 0 : index
      %53 = vector.load %arg7[%c0_31, %c0_32, %c0_33] : memref<1x2x128xf32, #tpu.memory_space<vmem>>, vector<1x2x128xf32>
      %54 = vector.shape_cast %53 : vector<1x2x128xf32> to vector<2x128xf32>
      %55 = vector.shape_cast %52 : vector<2x128xf32> to vector<1x2x128xf32>
      tpu.vector_store %arg7[%c0_31, %c0_32, %c0_33], %55 {strides = array<i32>} : memref<1x2x128xf32, #tpu.memory_space<vmem>>, vector<1x2x128xf32>,
    } else {
    }
    return
  }
  func.func @transform_0(%arg0: i32, %arg1: i32) -> (i32, i32) {
    %c0_i32 = arith.constant 0 : i32
    %c0_i32_0 = arith.constant 0 : i32
    return %arg0, %c0_i32 : i32, i32
  }
  func.func @transform_1(%arg0: i32, %arg1: i32) -> (i32, i32) {
    %c0_i32 = arith.constant 0 : i32
    %c0_i32_0 = arith.constant 0 : i32
    %c0_i32_1 = arith.constant 0 : i32
    return %c0_i32, %c0_i32_0 : i32, i32
  }
  func.func @transform_2(%arg0: i32, %arg1: i32) -> (i32, i32) {
    %c0_i32 = arith.constant 0 : i32
    %c0_i32_0 = arith.constant 0 : i32
    %c0_i32_1 = arith.constant 0 : i32
    return %c0_i32, %c0_i32_0 : i32, i32
  }
  func.func @transform_3(%arg0: i32, %arg1: i32) -> (i32, i32) {
    %c0_i32 = arith.constant 0 : i32
    %c0_i32_0 = arith.constant 0 : i32
    %c0_i32_1 = arith.constant 0 : i32
    return %c0_i32, %c0_i32_0 : i32, i32
  }
  func.func @transform_4(%arg0: i32, %arg1: i32) -> (i32, i32) {
    %c0_i32 = arith.constant 0 : i32
    %c0_i32_0 = arith.constant 0 : i32
    %c0_i32_1 = arith.constant 0 : i32
    return %c0_i32, %c0_i32_0 : i32, i32
  }
  func.func @transform_5(%arg0: i32, %arg1: i32) -> (i32, i32, i32) {
    %c0_i32 = arith.constant 0 : i32
    %c0_i32_0 = arith.constant 0 : i32
    %c0_i32_1 = arith.constant 0 : i32
    return %arg0, %c0_i32, %c0_i32_0 : i32, i32, i32
  }
}

</mosaic_0001>

<bundles_post_ra>
// kernel: tpu_custom_call.1
= control target key start
LH: loop header
LB: loop body
LE: loop exit
PB: predicated region body
PF: predicated region fallthrough
CT: control target
= control target key end

     0   :  { %s4476_s0 = inlined_call_operand.hbm [shape: f32[16,256], index: 0, kind: input, shape index: {}]   ;;  %s4477_s1 = inlined_call_operand.hbm [shape: f32[4,2048], index: 1, kind: input, shape index: {}]   ;;  %s4478_s2 = inlined_call_operand.hbm [shape: f32[1,2048], index: 2, kind: input, shape index: {}]   ;;  %s4479_s3 = inlined_call_operand.hbm [shape: f32[2048,128], index: 3, kind: input, shape index: {}]   ;;  %s4480_s4 = inlined_call_operand.vmem [shape: f32[1,128], index: 4, kind: input, shape index: {}]   ;;  %s4481_s5 = inlined_call_operand.hbm [shape: f32[2,2,128], index: 5, kind: output, shape index: {}]  }
   0x1   :  { %4484 = sst [smem:[#allocation24_spill]] %s4477_s1 }
   0x2   :  { %4485 = sst [smem:[#allocation25_spill]] %s4478_s2 }
   0x3   :  { %4486 = sst [smem:[#allocation26_spill]] %s4479_s3 }
   0x4   :  { %10 = vsyncpa [#allocation5], 0 }
   0x5   :  { %12 = vsyncpa [#allocation5 + $0x1], 0 }
   0x6   :  { %13 = vsyncpa [#allocation8], 0 }
   0x7   :  { %14 = vsyncpa [#allocation11], 0 }
   0x8   :  { %15 = vsyncpa [#allocation6], 0 }
   0x9   :  { %17 = vsyncpa [#allocation6 + $0x1], 0  ;;  %s3153_s18 = smov 0   ;;  %s3155_s19 = smov 0  }
   0xa   :  { %s3157_s20 = smov 0   ;;  %s3159_s21 = smov 0  }
   0xb   :  { %s3161_s22 = smov 0   ;;  %s3163_s23 = smov 0  }
   0xc   :  { %s3165_s24 = smov 0   ;;  %s3167_s25 = smov 0  }
   0xd LB: > { %s2486_s26 = sadd.s32 4294967295, %s3115_s25   ;;  %s2487_s27 = sadd.s32 4294967294, %s3115_s25   ;;  %s3115_s25 = sphi %s3167_s25, %s23_s25   ;;  %s3111_s24 = sphi %s3165_s24, %s4520_s24   ;;  %s3107_s23 = sphi %s3163_s23, %s4519_s23   ;;  %s3103_s22 = sphi %s3161_s22, %s4518_s22   ;;  %s3099_s21 = sphi %s3159_s21, %s4517_s21   ;;  %s3095_s20 = sphi %s3157_s20, %s4516_s20   ;;  %s3091_s19 = sphi %s3155_s19, %s4515_s19   ;;  %s3087_s18 = sphi %s3153_s18, %s4514_s18  }
   0xe   : > { %p55_p0 = scmp.ne.s32.totalorder %s3091_s19, %s3087_s18  ;;  %p3197_p1 = scmp.eq.s32.totalorder %s2486_s26, 0 }
   0xf   : > { %p3201_p2 = scmp.eq.s32.totalorder %s2486_s26, 7  ;;  %p169_p3 = scmp.eq.s32.totalorder %s2487_s27, 7 }
  0x10   : > { %p3207_p4 = por %p3197_p1, %p55_p0  ;;  %p2488_p5 = scmp.ge.s32.totalorder %s3115_s25, 1 }
  0x11   : > { %p3212_p6 = por %p169_p3, %p55_p0  ;;  %p176_p7 = scmp.lt.s32.totalorder %s3115_s25, 9 }
  0x12   : > { %s4491_s1 = sld [smem:[#allocation24_spill]]  ;;  %s3117_s11 = smov [#allocation7]  }
  0x13   : > { %p3220_p8 = pnand %p2488_p5, %p176_p7  ;;  %s190_s12 = sshll.u32 %s3117_s11, 4  ;;  %s191_s12 = int_to_ptr.vmem [resolvable:$true] %s190_s12 }
  0x14   : > { %s4493_s2 = sld [smem:[#allocation25_spill]]  ;;  %s3118_s7 = smov [#allocation9]  }
  0x15   : > { %p2791_p9 = pneg %p3220_p8  ;;  %s4495_s3 = sld [smem:[#allocation26_spill]] }
  0x16   : > { %s202_s8 = sshll.u32 %s3118_s7, 4  ;;  %s3119_s11 = smov [#allocation10]   ;;  %s203_s8 = int_to_ptr.vmem [resolvable:$true] %s202_s8 }
  0x17   : > { %p3231_p10 = pnand %p2791_p9, %p3197_p1  ;;  %s213_s13 = sshll.u32 %s3119_s11, 4  ;;  %s214_s13 = int_to_ptr.vmem [resolvable:$true] %s213_s13 }
  0x18   : > { %s188_s9 = sshll.u32 %s4491_s1, 4  ;;  %s3120_s14 = smov 128   ;;  %s189_s9 = int_to_ptr.hbm [resolvable:$true] %s188_s9 }
  0x19   : > { %2794 = dma.hbm_to_vmem [thread:$0]  (!%p3231_p10), %s189_s9, 1024, %s191_s12, [#allocation8]  }
  0x1a   : > { %s200_s15 = sshll.u32 %s4493_s2, 4  ;;  %s3121_s17 = smov 8   ;;  %s201_s15 = int_to_ptr.hbm [resolvable:$true] %s200_s15 }
  0x1b   : > { %s211_s27 = sshll.u32 %s4495_s3, 4  ;;  %s32_s26 = sadd.s32 1, %s3107_s23  ;;  %s212_s27 = int_to_ptr.hbm [resolvable:$true] %s211_s27 }
  0x1c   : > { %2797 = dma.hbm_to_vmem [thread:$0]  (!%p3231_p10), %s201_s15, 256, %s203_s8, [#allocation8]  }
  0x1d   : > { %2800 = dma.hbm_to_vmem [thread:$0]  (!%p3231_p10), %s212_s27, 32768, %s214_s13, [#allocation11], %s3120_s14, %s3120_s14, %s3121_s17  }
  0x1e   : > { %p33_p11 = scmp.ge.s32.totalorder %s32_s26, 4  ;;  %s35_s9 = sadd.s32 1, %s3111_s24 }
  0x1f   : > { %s42_s12 = sadd.s32 1, %s3095_s20  ;;  %p49_p12 = scmp.ne.s32.totalorder %s3095_s20, %s3091_s19 }
  0x20   : > { %s4522_s26 = smov (%p33_p11, %s32_s26), 0  ;;  %s4524_s9 = smov (!%p33_p11, %s35_s9), %s3111_s24 }
  0x21   : > { %4496 = sst [smem:[#allocation17_spill]] %s4522_s26  ;;  %p50_p13 = scmp.eq.s32.totalorder %s3115_s25, 0 }
  0x22   : > { %p3255_p0 = por %p3201_p2, %p49_p12  ;;  %p37_p3 = scmp.ge.s32.totalorder %s4524_s9, 2 }
  0x23   : > { %p2812_p5 = scmp.lt.s32.totalorder %s3115_s25, 8  ;;  %p3260_p7 = por %p50_p13, %p49_p12 }
  0x24   : > { %s230_s27 = sand.u32 1, %s3095_s20   ;;  %s4526_s9 = smov (%p37_p3, %s4524_s9), 0 }
  0x25   : > { %s2493_s7 = sshll.u32 %s230_s27, 4  ;;  %s39_s8 = ssub.s32 %s3111_s24, %s4526_s9 }
  0x26   : > { %p40_p9 = scmp.eq.s32.totalorder %s39_s8, 0  ;;  %s2774_s29 = sshll.u32 %s3111_s24, 4 }
  0x27   : > { %s239_s14 = scalar_lea.hbm %s4476_s0, %s2774_s29  ;;  %s234_s17 = scalar_lea.vmem [#allocation4], %s2493_s7 }
  0x28   : > { %s243_s1 = sshll.u32 %s234_s17, 4  ;;  %s241_s3 = sshll.u32 %s239_s14, 4  ;;  %s244_s1 = int_to_ptr.vmem [resolvable:$true] %s243_s1  ;;  %s242_s3 = int_to_ptr.hbm [resolvable:$true] %s241_s3 }
  0x29   : > { %s3274_s2 = scalar_select %p40_p9, %s3095_s20, %s42_s12  }
  0x2a   : > { %p2802_p2 = pnand %p2812_p5, %p3260_p7  ;;  %s231_s26 = scalar_lea.sflag [#allocation5], %s230_s27 }
  0x2b   : > { %252 = sbr.rel (%p3220_p8) target bundleno = 1073 (0x431), region = 40 }
  0x2c   : > { %2804 = dma.hbm_to_vmem [thread:$0]  (!%p2802_p2), %s242_s3, 256, %s244_s1, %s231_s26  }
  0x30   : > { %s3283_s8 = sand.u32 1, %s3091_s19  }
  0x31   : > { %s2497_s7 = sshll.u32 %s3283_s8, 4  ;;  %s255_s12 = scalar_lea.sflag [#allocation5], %s3283_s8 }
  0x32   : > { %s3287_s29 = scalar_lea.vmem [#allocation4], %s2497_s7 }
  0x33   : > { %3070 = dma.done.wait (%p3207_p4), %s255_s12, 256  }
  0x34   : > { %3072 = vsyncadd (%p3207_p4), %s255_s12, 4294967040 }
  0x35   : > { %3074 = dma.done.wait (%p3197_p1), [#allocation8], 1280  }
  0x36   : > { %3076 = vsyncadd (%p3197_p1), [#allocation8], 4294966016 }
  0x37   : > { %3078 = dma.done.wait (%p3197_p1), [#allocation11], 32768  }
  0x38   : > { %3080 = vsyncadd (%p3197_p1), [#allocation11], 4294934528  ;;  %s2501_s1 = sshll.u32 %s3283_s8, 1  ;;  %p2502_p8 = scmp.ne.s32.totalorder %s3099_s21, 0 }
  0x39   : > { %s3302_s3 = scalar_lea.vmem [#allocation12], %s2501_s1 }
  0x3a   : > { %304 = sbr.rel (%p2502_p8) target bundleno = 65 (0x41), region = 60 }
  0x3f   : > { %v3122_v0 = vmov 0.0  }
  0x40   : > { %305 = vst [vmem:[#allocation3] sm:$0x3] %v3122_v0 }
  0x41 PF: > { %v315_v1 = vld [vmem:[%s3287_s29] sm:$0xf]  ;;  %s2503_s30 = sshll.u32 %s3099_s21, 9  ;;  %v316_v4 = vld [vmem:[%s3287_s29 + $0x8] sm:$0xf]  ;;  %vm496_vm0 = vcmask 1043456  }
  0x42   : > { %326 = vxpose.xlu0.b32.start.end [1/1] (short) %v315_v1, 128  ;;  %s3309_s28 = sshra.s32 %s2503_s30, 7  ;;  %vm399_vm1 = vcmask 31744   ;;  %v1256_v21 = vld [vmem:[%s3287_s29] sm:$0xf0]  ;;  %s4006_s27 = scalar_lea.vmem [#allocation10], %s2503_s30  ;;  %vm1244_vm2 = vcmask 1040384  }
  0x43   : > { %s2504_s10 = sshll.u32 %s3309_s28, 2  ;;  %v1260_v22 = vrot.slane %v1256_v21, 4  ;;  %s313_s16 = scalar_lea.vmem [#allocation9], %s3309_s28  ;;  %vm1246_vm3 = vcmask 1042434   ;;  %vm1248_vm4 = vcmask 1041408  }
  0x44   : > { %s310_s26 = scalar_lea.vmem [#allocation7], %s2504_s10  ;;  %v3399_v38 = vld [vmem:[%s313_s16] sm:$0xf]  ;;  %p2769_p1 = scmp.ne.s32.totalorder %s3099_s21, 3 }
  0x45   : > { %v311_v2 = vld [vmem:[%s310_s26] sm:$0xff]  ;;  %v312_v3 = vld [vmem:[%s310_s26 + $0x8] sm:$0xff]  ;;  %1264 = vxpose.xlu1.b32.start.end [1/1] (short) %v1260_v22, 128  ;;  %v3402_v39 = vperm.slane %v3399_v38, 2  ;;  %v3405_v40 = vperm.slane %v3399_v38, 3 }
  0x46   : > { %392 = vst [vmem:[#allocation1] ss:$2 sm:$0xff] %v311_v2 }
  0x47   : > { %394 = vst [vmem:[#allocation1 + $0x10] ss:$2 sm:$0xff] %v312_v3 }
  0x48   : > { %4499 = vst [vmem:[#allocation18_spill] sm:$0xff] %v3405_v40 }
  0x4d   : > { %v395_v5 = vld.sshfl [vmem:[#allocation1] sm:$0xff pattern:$0x75316420]  ;;  %v396_v6 = vld.sshfl [vmem:[#allocation1 + $0x8] sm:$0xff pattern:$0x75316420] }
  0x4e   : > { %2505 = vmatpush.msk.msra.mxu0 %vm496_vm0, %v395_v5  ;;  %2538 = vmatpush.msk.msra.mxu1 %vm496_vm0, %v396_v6  ;;  %1328 = vst [vmem:[#allocation1] ss:$2 sm:$0xff] %v311_v2  ;;  %v397_v7 = vld.sshfl [vmem:[#allocation1 + $0x10] sm:$0xff pattern:$0x75316420] }
  0x4f   : > { %v398_v8 = vld.sshfl [vmem:[#allocation1 + $0x18] sm:$0xff pattern:$0x75316420]  ;;  %2571 = vmatpush.msk.msra.mxu2 %vm496_vm0, %v397_v7 }
  0x50   : > { %2604 = vmatpush.msk.msra.mxu3 %vm496_vm0, %v398_v8  ;;  %1330 = vst [vmem:[#allocation1 + $0x10] ss:$2 sm:$0xff] %v312_v3 }
  0x55   : > { %v1332_v9 = vld.sshfl [vmem:[#allocation1 + $0x8] sm:$0xff pattern:$0x75316420]  ;;  %v1331_v12 = vld.sshfl [vmem:[#allocation1] sm:$0xff pattern:$0x75316420] }
  0x56   : > { %2670 = vmatpush.msk.msrb.mxu1 %vm496_vm0, %v1332_v9  ;;  %2637 = vmatpush.msk.msrb.mxu0 %vm496_vm0, %v1331_v12 }
  0x57   : > { %v1333_v10 = vld.sshfl [vmem:[#allocation1 + $0x10] sm:$0xff pattern:$0x75316420]  ;;  %v1334_v11 = vld.sshfl [vmem:[#allocation1 + $0x18] sm:$0xff pattern:$0x75316420] }
  0x58   : > { %2703 = vmatpush.msk.msrb.mxu2 %vm496_vm0, %v1333_v10  ;;  %2736 = vmatpush.msk.msrb.mxu3 %vm496_vm0, %v1334_v11 }
  0xc2   : > { %358 = vxpose.xlu0.b32.start.end [1/1] (short) %v316_v4, 128 }
  0xe6   : > { %v342_v13 = vpop.trf.xlu0 }
  0xe7   : > { %2506 = vmatmul.msk.f32.vlgmr.msra.gmra.mxu0 %vm399_vm1, %v342_v13  ;;  %2539 = vmatmul.msk.f32.vlgmr.msra.gmra.mxu1 %vm399_vm1, %v342_v13 }
  0xe8   : > { %2572 = vmatmul.msk.f32.vlgmr.msra.gmra.mxu2 %vm399_vm1, %v342_v13  ;;  %2605 = vmatmul.msk.f32.vlgmr.msra.gmra.mxu3 %vm399_vm1, %v342_v13 }
  0xee   : > { %v343_v14 = vpop.trf.xlu0 }
  0xef   : > { %2507 = vmatmul.msk.f32.gmra.mxu0 %vm399_vm1, %v343_v14  ;;  %2540 = vmatmul.msk.f32.gmra.mxu1 %vm399_vm1, %v343_v14 }
  0xf0   : > { %2573 = vmatmul.msk.f32.gmra.mxu2 %vm399_vm1, %v343_v14  ;;  %2606 = vmatmul.msk.f32.gmra.mxu3 %vm399_vm1, %v343_v14 }
  0xf6   : > { %v344_v15 = vpop.trf.xlu0 }
  0xf7   : > { %2508 = vmatmul.msk.f32.gmra.mxu0 %vm399_vm1, %v344_v15  ;;  %2541 = vmatmul.msk.f32.gmra.mxu1 %vm399_vm1, %v344_v15 }
  0xf8   : > { %2574 = vmatmul.msk.f32.gmra.mxu2 %vm399_vm1, %v344_v15  ;;  %2607 = vmatmul.msk.f32.gmra.mxu3 %vm399_vm1, %v344_v15 }
  0xfe   : > { %v345_v16 = vpop.trf.xlu0 }
  0xff   : > { %2509 = vmatmul.msk.f32.gmra.mxu0 %vm399_vm1, %v345_v16  ;;  %2542 = vmatmul.msk.f32.gmra.mxu1 %vm399_vm1, %v345_v16 }
 0x100   : > { %2575 = vmatmul.msk.f32.gmra.mxu2 %vm399_vm1, %v345_v16  ;;  %2608 = vmatmul.msk.f32.gmra.mxu3 %vm399_vm1, %v345_v16 }
 0x106   : > { %v346_v17 = vpop.trf.xlu0 }
 0x107   : > { %2510 = vmatmul.msk.f32.gmra.mxu0 %vm399_vm1, %v346_v17  ;;  %2543 = vmatmul.msk.f32.gmra.mxu1 %vm399_vm1, %v346_v17 }
 0x108   : > { %2576 = vmatmul.msk.f32.gmra.mxu2 %vm399_vm1, %v346_v17  ;;  %2609 = vmatmul.msk.f32.gmra.mxu3 %vm399_vm1, %v346_v17 }
 0x10e   : > { %v347_v18 = vpop.trf.xlu0 }
 0x10f   : > { %2511 = vmatmul.msk.f32.gmra.mxu0 %vm399_vm1, %v347_v18  ;;  %2544 = vmatmul.msk.f32.gmra.mxu1 %vm399_vm1, %v347_v18 }
 0x110   : > { %2577 = vmatmul.msk.f32.gmra.mxu2 %vm399_vm1, %v347_v18  ;;  %2610 = vmatmul.msk.f32.gmra.mxu3 %vm399_vm1, %v347_v18 }
 0x116   : > { %v348_v19 = vpop.trf.xlu0 }
 0x117   : > { %2512 = vmatmul.msk.f32.gmra.mxu0 %vm399_vm1, %v348_v19  ;;  %2545 = vmatmul.msk.f32.gmra.mxu1 %vm399_vm1, %v348_v19 }
 0x118   : > { %2578 = vmatmul.msk.f32.gmra.mxu2 %vm399_vm1, %v348_v19  ;;  %2611 = vmatmul.msk.f32.gmra.mxu3 %vm399_vm1, %v348_v19 }
 0x11e   : > { %v349_v20 = vpop.trf.xlu0 }
 0x11f   : > { %2513 = vmatmul.msk.f32.gmra.mxu0 %vm399_vm1, %v349_v20  ;;  %2546 = vmatmul.msk.f32.gmra.mxu1 %vm399_vm1, %v349_v20 }
 0x120   : > { %2579 = vmatmul.msk.f32.gmra.mxu2 %vm399_vm1, %v349_v20  ;;  %2612 = vmatmul.msk.f32.gmra.mxu3 %vm399_vm1, %v349_v20 }
 0x126   : > { %v350_v23 = vpop.trf.xlu0 }
 0x127   : > { %2514 = vmatmul.msk.f32.gmra.mxu0 %vm399_vm1, %v350_v23  ;;  %2547 = vmatmul.msk.f32.gmra.mxu1 %vm399_vm1, %v350_v23 }
 0x128   : > { %2580 = vmatmul.msk.f32.gmra.mxu2 %vm399_vm1, %v350_v23  ;;  %2613 = vmatmul.msk.f32.gmra.mxu3 %vm399_vm1, %v350_v23 }
 0x12e   : > { %v351_v24 = vpop.trf.xlu0 }
 0x12f   : > { %2515 = vmatmul.msk.f32.gmra.mxu0 %vm399_vm1, %v351_v24  ;;  %2548 = vmatmul.msk.f32.gmra.mxu1 %vm399_vm1, %v351_v24 }
 0x130   : > { %2581 = vmatmul.msk.f32.gmra.mxu2 %vm399_vm1, %v351_v24  ;;  %2614 = vmatmul.msk.f32.gmra.mxu3 %vm399_vm1, %v351_v24 }
 0x136   : > { %v352_v25 = vpop.trf.xlu0 }
 0x137   : > { %2516 = vmatmul.msk.f32.gmra.mxu0 %vm399_vm1, %v352_v25  ;;  %2549 = vmatmul.msk.f32.gmra.mxu1 %vm399_vm1, %v352_v25 }
 0x138   : > { %2582 = vmatmul.msk.f32.gmra.mxu2 %vm399_vm1, %v352_v25  ;;  %2615 = vmatmul.msk.f32.gmra.mxu3 %vm399_vm1, %v352_v25 }
 0x13e   : > { %v353_v26 = vpop.trf.xlu0 }
 0x13f   : > { %2517 = vmatmul.msk.f32.gmra.mxu0 %vm399_vm1, %v353_v26  ;;  %2550 = vmatmul.msk.f32.gmra.mxu1 %vm399_vm1, %v353_v26 }
 0x140   : > { %2583 = vmatmul.msk.f32.gmra.mxu2 %vm399_vm1, %v353_v26  ;;  %2616 = vmatmul.msk.f32.gmra.mxu3 %vm399_vm1, %v353_v26 }
 0x146   : > { %v354_v27 = vpop.trf.xlu0 }
 0x147   : > { %2518 = vmatmul.msk.f32.gmra.mxu0 %vm399_vm1, %v354_v27  ;;  %2551 = vmatmul.msk.f32.gmra.mxu1 %vm399_vm1, %v354_v27 }
 0x148   : > { %2584 = vmatmul.msk.f32.gmra.mxu2 %vm399_vm1, %v354_v27  ;;  %2617 = vmatmul.msk.f32.gmra.mxu3 %vm399_vm1, %v354_v27 }
 0x14e   : > { %v355_v28 = vpop.trf.xlu0 }
 0x14f   : > { %2519 = vmatmul.msk.f32.gmra.mxu0 %vm399_vm1, %v355_v28  ;;  %2552 = vmatmul.msk.f32.gmra.mxu1 %vm399_vm1, %v355_v28 }
 0x150   : > { %2585 = vmatmul.msk.f32.gmra.mxu2 %vm399_vm1, %v355_v28  ;;  %2618 = vmatmul.msk.f32.gmra.mxu3 %vm399_vm1, %v355_v28 }
 0x156   : > { %v356_v29 = vpop.trf.xlu0 }
 0x157   : > { %2520 = vmatmul.msk.f32.gmra.mxu0 %vm399_vm1, %v356_v29  ;;  %2553 = vmatmul.msk.f32.gmra.mxu1 %vm399_vm1, %v356_v29 }
 0x158   : > { %2586 = vmatmul.msk.f32.gmra.mxu2 %vm399_vm1, %v356_v29  ;;  %2619 = vmatmul.msk.f32.gmra.mxu3 %vm399_vm1, %v356_v29 }
 0x15e   : > { %v357_v30 = vpop.trf.xlu0 }
 0x15f   : > { %2521 = vmatmul.msk.f32.gmra.mxu0 %vm399_vm1, %v357_v30  ;;  %2554 = vmatmul.msk.f32.gmra.mxu1 %vm399_vm1, %v357_v30 }
 0x160   : > { %2587 = vmatmul.msk.f32.gmra.mxu2 %vm399_vm1, %v357_v30  ;;  %2620 = vmatmul.msk.f32.gmra.mxu3 %vm399_vm1, %v357_v30 }
 0x164   : > { %v3386_v31 = vpop.f32.mrf.mxu0  ;;  %v3388_v32 = vpop.f32.mrf.mxu1 }
 0x166   : > { %v374_v33 = vpop.trf.xlu0 }
 0x167   : > { %2522 = vmatmul.msk.f32.gmra.mxu0 %vm399_vm1, %v374_v33  ;;  %2555 = vmatmul.msk.f32.gmra.mxu1 %vm399_vm1, %v374_v33 }
 0x168   : > { %2588 = vmatmul.msk.f32.gmra.mxu2 %vm399_vm1, %v374_v33  ;;  %2621 = vmatmul.msk.f32.gmra.mxu3 %vm399_vm1, %v374_v33 }
 0x16b   : > { %v748_v34 = vpop.f32.mrf.mxu2  ;;  %v861_v35 = vpop.f32.mrf.mxu3 }
 0x16c   : > { %v3394_v36 = vpop.f32.mrf.mxu0  ;;  %v3396_v37 = vpop.f32.mrf.mxu1  ;;  %v749_v42 = vadd.f32 %v748_v34, %v3402_v39  ;;  %v862_v43 = vadd.f32 %v861_v35, %v3405_v40 }
 0x16e   : > { %v375_v41 = vpop.trf.xlu0  ;;  %v959_v50 = vmax.f32 %v749_v42, 0.0  ;;  %v960_v51 = vmax.f32 %v862_v43, 0.0 }
 0x16f   : > { %2523 = vmatmul.msk.f32.gmra.mxu0 %vm399_vm1, %v375_v41  ;;  %2556 = vmatmul.msk.f32.gmra.mxu1 %vm399_vm1, %v375_v41 }
 0x170   : > { %2589 = vmatmul.msk.f32.gmra.mxu2 %vm399_vm1, %v375_v41  ;;  %2622 = vmatmul.msk.f32.gmra.mxu3 %vm399_vm1, %v375_v41 }
 0x173   : > { %v751_v44 = vpop.f32.mrf.mxu2  ;;  %v864_v45 = vpop.f32.mrf.mxu3 }
 0x174   : > { %v752_v46 = vadd.f32 %v751_v44, %v3402_v39  ;;  %v865_v47 = vadd.f32 %v864_v45, %v3405_v40  ;;  %v3415_v48 = vpop.f32.mrf.mxu0  ;;  %v3417_v49 = vpop.f32.mrf.mxu1 }
 0x176   : > { %v963_v52 = vmax.f32 %v752_v46, 0.0  ;;  %v964_v53 = vmax.f32 %v865_v47, 0.0  ;;  %v376_v54 = vpop.trf.xlu0 }
 0x177   : > { %2524 = vmatmul.msk.f32.gmra.mxu0 %vm399_vm1, %v376_v54  ;;  %2557 = vmatmul.msk.f32.gmra.mxu1 %vm399_vm1, %v376_v54 }
 0x178   : > { %v1159_v55 = vadd.f32 %v963_v52, %v959_v50  ;;  %v1196_v56 = vadd.f32 %v964_v53, %v960_v51  ;;  %2590 = vmatmul.msk.f32.gmra.mxu2 %vm399_vm1, %v376_v54  ;;  %2623 = vmatmul.msk.f32.gmra.mxu3 %vm399_vm1, %v376_v54 }
 0x17b   : > { %v754_v57 = vpop.f32.mrf.mxu2  ;;  %v867_v58 = vpop.f32.mrf.mxu3 }
 0x17c   : > { %v755_v59 = vadd.f32 %v754_v57, %v3402_v39  ;;  %v868_v60 = vadd.f32 %v867_v58, %v3405_v40  ;;  %v3425_v61 = vpop.f32.mrf.mxu0  ;;  %v3427_v62 = vpop.f32.mrf.mxu1  ;;  %v1257_v57 = vld [vmem:[%s3287_s29 + $0x8] sm:$0xf0] }
 0x17d   : > { %v1261_v58 = vrot.slane %v1257_v57, 4 }
 0x17e   : > { %v967_v63 = vmax.f32 %v755_v59, 0.0  ;;  %v968_v0 = vmax.f32 %v868_v60, 0.0  ;;  %v377_v1 = vpop.trf.xlu0 }
 0x17f   : > { %2525 = vmatmul.msk.f32.gmra.mxu0 %vm399_vm1, %v377_v1  ;;  %2558 = vmatmul.msk.f32.gmra.mxu1 %vm399_vm1, %v377_v1 }
 0x180   : > { %v1160_v2 = vadd.f32 %v1159_v55, %v967_v63  ;;  %v1197_v3 = vadd.f32 %v1196_v56, %v968_v0  ;;  %2591 = vmatmul.msk.f32.gmra.mxu2 %vm399_vm1, %v377_v1  ;;  %2624 = vmatmul.msk.f32.gmra.mxu3 %vm399_vm1, %v377_v1 }
 0x181   : > { %1296 = vxpose.xlu1.b32.start.end [1/1] (short) %v1261_v58, 128 }
 0x183   : > { %v757_v4 = vpop.f32.mrf.mxu2  ;;  %v870_v5 = vpop.f32.mrf.mxu3 }
 0x184   : > { %v758_v6 = vadd.f32 %v757_v4, %v3402_v39  ;;  %v871_v7 = vadd.f32 %v870_v5, %v3405_v40  ;;  %v3435_v8 = vpop.f32.mrf.mxu0  ;;  %v3437_v9 = vpop.f32.mrf.mxu1 }
 0x186   : > { %v971_v10 = vmax.f32 %v758_v6, 0.0  ;;  %v972_v11 = vmax.f32 %v871_v7, 0.0  ;;  %v378_v12 = vpop.trf.xlu0 }
 0x187   : > { %2526 = vmatmul.msk.f32.gmra.mxu0 %vm399_vm1, %v378_v12  ;;  %2559 = vmatmul.msk.f32.gmra.mxu1 %vm399_vm1, %v378_v12 }
 0x188   : > { %v1161_v13 = vadd.f32 %v1160_v2, %v971_v10  ;;  %v1198_v14 = vadd.f32 %v1197_v3, %v972_v11  ;;  %2592 = vmatmul.msk.f32.gmra.mxu2 %vm399_vm1, %v378_v12  ;;  %2625 = vmatmul.msk.f32.gmra.mxu3 %vm399_vm1, %v378_v12 }
 0x18b   : > { %v760_v15 = vpop.f32.mrf.mxu2  ;;  %v873_v16 = vpop.f32.mrf.mxu3 }
 0x18c   : > { %v761_v17 = vadd.f32 %v760_v15, %v3402_v39  ;;  %v874_v18 = vadd.f32 %v873_v16, %v3405_v40  ;;  %v3445_v19 = vpop.f32.mrf.mxu0  ;;  %v3447_v20 = vpop.f32.mrf.mxu1 }
 0x18e   : > { %v975_v21 = vmax.f32 %v761_v17, 0.0  ;;  %v976_v22 = vmax.f32 %v874_v18, 0.0  ;;  %v379_v23 = vpop.trf.xlu0 }
 0x18f   : > { %2527 = vmatmul.msk.f32.gmra.mxu0 %vm399_vm1, %v379_v23  ;;  %2560 = vmatmul.msk.f32.gmra.mxu1 %vm399_vm1, %v379_v23 }
 0x190   : > { %v1162_v24 = vadd.f32 %v1161_v13, %v975_v21  ;;  %v1199_v25 = vadd.f32 %v1198_v14, %v976_v22  ;;  %2593 = vmatmul.msk.f32.gmra.mxu2 %vm399_vm1, %v379_v23  ;;  %2626 = vmatmul.msk.f32.gmra.mxu3 %vm399_vm1, %v379_v23 }
 0x193   : > { %v763_v26 = vpop.f32.mrf.mxu2  ;;  %v876_v27 = vpop.f32.mrf.mxu3 }
 0x194   : > { %v764_v28 = vadd.f32 %v763_v26, %v3402_v39  ;;  %v877_v29 = vadd.f32 %v876_v27, %v3405_v40  ;;  %v3455_v30 = vpop.f32.mrf.mxu0  ;;  %v3457_v33 = vpop.f32.mrf.mxu1 }
 0x196   : > { %v979_v34 = vmax.f32 %v764_v28, 0.0  ;;  %v980_v35 = vmax.f32 %v877_v29, 0.0  ;;  %v380_v41 = vpop.trf.xlu0 }
 0x197   : > { %2528 = vmatmul.msk.f32.gmra.mxu0 %vm399_vm1, %v380_v41  ;;  %2561 = vmatmul.msk.f32.gmra.mxu1 %vm399_vm1, %v380_v41 }
 0x198   : > { %v1163_v42 = vadd.f32 %v1162_v24, %v979_v34  ;;  %v1200_v43 = vadd.f32 %v1199_v25, %v980_v35  ;;  %2594 = vmatmul.msk.f32.gmra.mxu2 %vm399_vm1, %v380_v41  ;;  %2627 = vmatmul.msk.f32.gmra.mxu3 %vm399_vm1, %v380_v41 }
 0x19b   : > { %v766_v44 = vpop.f32.mrf.mxu2  ;;  %v879_v45 = vpop.f32.mrf.mxu3 }
 0x19c   : > { %v767_v46 = vadd.f32 %v766_v44, %v3402_v39  ;;  %v880_v47 = vadd.f32 %v879_v45, %v3405_v40  ;;  %v3465_v50 = vpop.f32.mrf.mxu0  ;;  %v3467_v51 = vpop.f32.mrf.mxu1 }
 0x19e   : > { %v983_v52 = vmax.f32 %v767_v46, 0.0  ;;  %v984_v53 = vmax.f32 %v880_v47, 0.0  ;;  %v381_v54 = vpop.trf.xlu0 }
 0x19f   : > { %2529 = vmatmul.msk.f32.gmra.mxu0 %vm399_vm1, %v381_v54  ;;  %2562 = vmatmul.msk.f32.gmra.mxu1 %vm399_vm1, %v381_v54 }
 0x1a0   : > { %v1164_v55 = vadd.f32 %v1163_v42, %v983_v52  ;;  %v1201_v56 = vadd.f32 %v1200_v43, %v984_v53  ;;  %2595 = vmatmul.msk.f32.gmra.mxu2 %vm399_vm1, %v381_v54  ;;  %2628 = vmatmul.msk.f32.gmra.mxu3 %vm399_vm1, %v381_v54 }
 0x1a3   : > { %v769_v59 = vpop.f32.mrf.mxu2  ;;  %v882_v60 = vpop.f32.mrf.mxu3 }
 0x1a4   : > { %v770_v63 = vadd.f32 %v769_v59, %v3402_v39  ;;  %v883_v0 = vadd.f32 %v882_v60, %v3405_v40  ;;  %v3476_v1 = vpop.f32.mrf.mxu0  ;;  %v3478_v2 = vpop.f32.mrf.mxu1 }
 0x1a6   : > { %v987_v3 = vmax.f32 %v770_v63, 0.0  ;;  %v988_v4 = vmax.f32 %v883_v0, 0.0  ;;  %v382_v5 = vpop.trf.xlu0 }
 0x1a7   : > { %2530 = vmatmul.msk.f32.gmra.mxu0 %vm399_vm1, %v382_v5  ;;  %2563 = vmatmul.msk.f32.gmra.mxu1 %vm399_vm1, %v382_v5 }
 0x1a8   : > { %v1165_v6 = vadd.f32 %v1164_v55, %v987_v3  ;;  %v1202_v7 = vadd.f32 %v1201_v56, %v988_v4  ;;  %2596 = vmatmul.msk.f32.gmra.mxu2 %vm399_vm1, %v382_v5  ;;  %2629 = vmatmul.msk.f32.gmra.mxu3 %vm399_vm1, %v382_v5 }
 0x1ab   : > { %v772_v10 = vpop.f32.mrf.mxu2  ;;  %v885_v11 = vpop.f32.mrf.mxu3 }
 0x1ac   : > { %v773_v12 = vadd.f32 %v772_v10, %v3402_v39  ;;  %v886_v13 = vadd.f32 %v885_v11, %v3405_v40  ;;  %v3486_v14 = vpop.f32.mrf.mxu0  ;;  %v3488_v15 = vpop.f32.mrf.mxu1 }
 0x1ae   : > { %v991_v16 = vmax.f32 %v773_v12, 0.0  ;;  %v992_v17 = vmax.f32 %v886_v13, 0.0  ;;  %v383_v18 = vpop.trf.xlu0 }
 0x1af   : > { %2531 = vmatmul.msk.f32.gmra.mxu0 %vm399_vm1, %v383_v18  ;;  %2564 = vmatmul.msk.f32.gmra.mxu1 %vm399_vm1, %v383_v18 }
 0x1b0   : > { %v1166_v21 = vadd.f32 %v1165_v6, %v991_v16  ;;  %v1203_v22 = vadd.f32 %v1202_v7, %v992_v17  ;;  %2597 = vmatmul.msk.f32.gmra.mxu2 %vm399_vm1, %v383_v18  ;;  %2630 = vmatmul.msk.f32.gmra.mxu3 %vm399_vm1, %v383_v18  ;;  %v3522_v7 = vpop.trf.xlu1 }
 0x1b3   : > { %v775_v23 = vpop.f32.mrf.mxu2  ;;  %v888_v24 = vpop.f32.mrf.mxu3 }
 0x1b4   : > { %v776_v25 = vadd.f32 %v775_v23, %v3402_v39  ;;  %v889_v26 = vadd.f32 %v888_v24, %v3405_v40  ;;  %v3496_v27 = vpop.f32.mrf.mxu0  ;;  %v3498_v28 = vpop.f32.mrf.mxu1 }
 0x1b6   : > { %v995_v29 = vmax.f32 %v776_v25, 0.0  ;;  %v996_v34 = vmax.f32 %v889_v26, 0.0  ;;  %v384_v35 = vpop.trf.xlu0 }
 0x1b7   : > { %2532 = vmatmul.msk.f32.gmra.mxu0 %vm399_vm1, %v384_v35  ;;  %2565 = vmatmul.msk.f32.gmra.mxu1 %vm399_vm1, %v384_v35 }
 0x1b8   : > { %v1167_v41 = vadd.f32 %v1166_v21, %v995_v29  ;;  %v1204_v42 = vadd.f32 %v1203_v22, %v996_v34  ;;  %2598 = vmatmul.msk.f32.gmra.mxu2 %vm399_vm1, %v384_v35  ;;  %2631 = vmatmul.msk.f32.gmra.mxu3 %vm399_vm1, %v384_v35  ;;  %v3534_v25 = vpop.trf.xlu1 }
 0x1bb   : > { %v778_v43 = vpop.f32.mrf.mxu2  ;;  %v891_v44 = vpop.f32.mrf.mxu3 }
 0x1bc   : > { %v779_v45 = vadd.f32 %v778_v43, %v3402_v39  ;;  %v892_v46 = vadd.f32 %v891_v44, %v3405_v40  ;;  %v3506_v47 = vpop.f32.mrf.mxu0  ;;  %v3508_v52 = vpop.f32.mrf.mxu1 }
 0x1be   : > { %v999_v53 = vmax.f32 %v779_v45, 0.0  ;;  %v1000_v54 = vmax.f32 %v892_v46, 0.0  ;;  %v385_v55 = vpop.trf.xlu0 }
 0x1bf   : > { %2533 = vmatmul.msk.f32.gmra.mxu0 %vm399_vm1, %v385_v55  ;;  %2566 = vmatmul.msk.f32.gmra.mxu1 %vm399_vm1, %v385_v55 }
 0x1c0   : > { %v1168_v56 = vadd.f32 %v1167_v41, %v999_v53  ;;  %v1205_v57 = vadd.f32 %v1204_v42, %v1000_v54  ;;  %2599 = vmatmul.msk.f32.gmra.mxu2 %vm399_vm1, %v385_v55  ;;  %2632 = vmatmul.msk.f32.gmra.mxu3 %vm399_vm1, %v385_v55  ;;  %v3546_v54 = vpop.trf.xlu1 }
 0x1c3   : > { %v781_v58 = vpop.f32.mrf.mxu2  ;;  %v894_v59 = vpop.f32.mrf.mxu3 }
 0x1c4   : > { %v782_v60 = vadd.f32 %v781_v58, %v3402_v39  ;;  %v895_v63 = vadd.f32 %v894_v59, %v3405_v40  ;;  %v3516_v0 = vpop.f32.mrf.mxu0  ;;  %v3518_v3 = vpop.f32.mrf.mxu1 }
 0x1c6   : > { %v1003_v4 = vmax.f32 %v782_v60, 0.0  ;;  %v1004_v5 = vmax.f32 %v895_v63, 0.0  ;;  %v386_v6 = vpop.trf.xlu0 }
 0x1c7   : > { %2534 = vmatmul.msk.f32.gmra.mxu0 %vm399_vm1, %v386_v6  ;;  %2567 = vmatmul.msk.f32.gmra.mxu1 %vm399_vm1, %v386_v6 }
 0x1c8   : > { %v1169_v10 = vadd.f32 %v1168_v56, %v1003_v4  ;;  %v1206_v11 = vadd.f32 %v1205_v57, %v1004_v5  ;;  %2600 = vmatmul.msk.f32.gmra.mxu2 %vm399_vm1, %v386_v6  ;;  %2633 = vmatmul.msk.f32.gmra.mxu3 %vm399_vm1, %v386_v6 }
 0x1cb   : > { %v784_v12 = vpop.f32.mrf.mxu2  ;;  %v897_v13 = vpop.f32.mrf.mxu3 }
 0x1cc   : > { %v785_v16 = vadd.f32 %v784_v12, %v3402_v39  ;;  %v898_v17 = vadd.f32 %v897_v13, %v3405_v40  ;;  %v3528_v18 = vpop.f32.mrf.mxu0  ;;  %v3530_v21 = vpop.f32.mrf.mxu1 }
 0x1ce   : > { %v1007_v22 = vmax.f32 %v785_v16, 0.0  ;;  %v1008_v23 = vmax.f32 %v898_v17, 0.0  ;;  %v387_v24 = vpop.trf.xlu0 }
 0x1cf   : > { %2535 = vmatmul.msk.f32.gmra.mxu0 %vm399_vm1, %v387_v24  ;;  %2568 = vmatmul.msk.f32.gmra.mxu1 %vm399_vm1, %v387_v24 }
 0x1d0   : > { %v1170_v26 = vadd.f32 %v1169_v10, %v1007_v22  ;;  %v1207_v29 = vadd.f32 %v1206_v11, %v1008_v23  ;;  %2601 = vmatmul.msk.f32.gmra.mxu2 %vm399_vm1, %v387_v24  ;;  %2634 = vmatmul.msk.f32.gmra.mxu3 %vm399_vm1, %v387_v24  ;;  %v3558_v11 = vpop.trf.xlu1 }
 0x1d3   : > { %v787_v34 = vpop.f32.mrf.mxu2  ;;  %v900_v35 = vpop.f32.mrf.mxu3 }
 0x1d4   : > { %v788_v41 = vadd.f32 %v787_v34, %v3402_v39  ;;  %v901_v42 = vadd.f32 %v900_v35, %v3405_v40  ;;  %v3540_v43 = vpop.f32.mrf.mxu0  ;;  %v3542_v44 = vpop.f32.mrf.mxu1 }
 0x1d6   : > { %v1011_v45 = vmax.f32 %v788_v41, 0.0  ;;  %v1012_v46 = vmax.f32 %v901_v42, 0.0  ;;  %v388_v53 = vpop.trf.xlu0 }
 0x1d7   : > { %2536 = vmatmul.msk.f32.gmra.mxu0 %vm399_vm1, %v388_v53  ;;  %2569 = vmatmul.msk.f32.gmra.mxu1 %vm399_vm1, %v388_v53 }
 0x1d8   : > { %v1171_v55 = vadd.f32 %v1170_v26, %v1011_v45  ;;  %v1208_v56 = vadd.f32 %v1207_v29, %v1012_v46  ;;  %2602 = vmatmul.msk.f32.gmra.mxu2 %vm399_vm1, %v388_v53  ;;  %2635 = vmatmul.msk.f32.gmra.mxu3 %vm399_vm1, %v388_v53  ;;  %v3572_v35 = vpop.trf.xlu1 }
 0x1db   : > { %v790_v57 = vpop.f32.mrf.mxu2  ;;  %v903_v58 = vpop.f32.mrf.mxu3 }
 0x1dc   : > { %v791_v59 = vadd.f32 %v790_v57, %v3402_v39  ;;  %v904_v60 = vadd.f32 %v903_v58, %v3405_v40  ;;  %v3552_v63 = vpop.f32.mrf.mxu0  ;;  %v3554_v4 = vpop.f32.mrf.mxu1 }
 0x1de   : > { %v1015_v5 = vmax.f32 %v791_v59, 0.0  ;;  %v1016_v6 = vmax.f32 %v904_v60, 0.0  ;;  %v389_v10 = vpop.trf.xlu0 }
 0x1df   : > { %2537 = vmatmul.msk.f32.gmra.mxu0 %vm399_vm1, %v389_v10  ;;  %2570 = vmatmul.msk.f32.gmra.mxu1 %vm399_vm1, %v389_v10 }
 0x1e0   : > { %v1172_v12 = vadd.f32 %v1171_v55, %v1015_v5  ;;  %v1209_v13 = vadd.f32 %v1208_v56, %v1016_v6  ;;  %2603 = vmatmul.msk.f32.gmra.mxu2 %vm399_vm1, %v389_v10  ;;  %2636 = vmatmul.msk.f32.gmra.mxu3 %vm399_vm1, %v389_v10  ;;  %v3588_v60 = vpop.trf.xlu1 }
 0x1e3   : > { %v793_v16 = vpop.f32.mrf.mxu2  ;;  %v906_v17 = vpop.f32.mrf.mxu3 }
 0x1e4   : > { %v794_v22 = vadd.f32 %v793_v16, %v3402_v39  ;;  %v907_v23 = vadd.f32 %v906_v17, %v3405_v40  ;;  %v3564_v24 = vpop.f32.mrf.mxu0  ;;  %v3566_v26 = vpop.f32.mrf.mxu1 }
 0x1e6   : > { %v1019_v29 = vmax.f32 %v794_v22, 0.0  ;;  %v1020_v34 = vmax.f32 %v907_v23, 0.0 }
 0x1e7   : > { %2638 = vmatmul.msk.f32.vlgmr.msrb.gmra.mxu0 %vm399_vm1, %v3522_v7  ;;  %2671 = vmatmul.msk.f32.vlgmr.msrb.gmra.mxu1 %vm399_vm1, %v3522_v7 }
 0x1e8   : > { %v1173_v41 = vadd.f32 %v1172_v12, %v1019_v29  ;;  %v1210_v42 = vadd.f32 %v1209_v13, %v1020_v34  ;;  %2704 = vmatmul.msk.f32.vlgmr.msrb.gmra.mxu2 %vm399_vm1, %v3522_v7  ;;  %2737 = vmatmul.msk.f32.vlgmr.msrb.gmra.mxu3 %vm399_vm1, %v3522_v7  ;;  %v3604_v29 = vpop.trf.xlu1 }
 0x1eb   : > { %v796_v45 = vpop.f32.mrf.mxu2  ;;  %v909_v46 = vpop.f32.mrf.mxu3 }
 0x1ec   : > { %v797_v53 = vadd.f32 %v796_v45, %v3402_v39  ;;  %v910_v55 = vadd.f32 %v909_v46, %v3405_v40  ;;  %v3580_v56 = vpop.f32.mrf.mxu0  ;;  %v3582_v57 = vpop.f32.mrf.mxu1 }
 0x1ee   : > { %v1023_v58 = vmax.f32 %v797_v53, 0.0  ;;  %v1024_v59 = vmax.f32 %v910_v55, 0.0 }
 0x1ef   : > { %2639 = vmatmul.msk.f32.gmra.mxu0 %vm399_vm1, %v3534_v25  ;;  %2672 = vmatmul.msk.f32.gmra.mxu1 %vm399_vm1, %v3534_v25 }
 0x1f0   : > { %v1174_v7 = vadd.f32 %v1173_v41, %v1023_v58  ;;  %v1211_v5 = vadd.f32 %v1210_v42, %v1024_v59  ;;  %2705 = vmatmul.msk.f32.gmra.mxu2 %vm399_vm1, %v3534_v25  ;;  %2738 = vmatmul.msk.f32.gmra.mxu3 %vm399_vm1, %v3534_v25 }
 0x1f3   : > { %v799_v6 = vpop.f32.mrf.mxu2  ;;  %v912_v10 = vpop.f32.mrf.mxu3 }
 0x1f4   : > { %v800_v12 = vadd.f32 %v799_v6, %v3402_v39  ;;  %v913_v13 = vadd.f32 %v912_v10, %v3405_v40  ;;  %v3596_v16 = vpop.f32.mrf.mxu0  ;;  %v3598_v17 = vpop.f32.mrf.mxu1 }
 0x1f6   : > { %v1027_v22 = vmax.f32 %v800_v12, 0.0  ;;  %v1028_v23 = vmax.f32 %v913_v13, 0.0 }
 0x1f7   : > { %2640 = vmatmul.msk.f32.gmra.mxu0 %vm399_vm1, %v3546_v54  ;;  %2673 = vmatmul.msk.f32.gmra.mxu1 %vm399_vm1, %v3546_v54 }
 0x1f8   : > { %v1175_v25 = vadd.f32 %v1174_v7, %v1027_v22  ;;  %v1212_v34 = vadd.f32 %v1211_v5, %v1028_v23  ;;  %2706 = vmatmul.msk.f32.gmra.mxu2 %vm399_vm1, %v3546_v54  ;;  %2739 = vmatmul.msk.f32.gmra.mxu3 %vm399_vm1, %v3546_v54  ;;  %v3620_v7 = vpop.trf.xlu1 }
 0x1fb   : > { %v802_v41 = vpop.f32.mrf.mxu2  ;;  %v915_v42 = vpop.f32.mrf.mxu3 }
 0x1fc   : > { %v803_v45 = vadd.f32 %v802_v41, %v3402_v39  ;;  %v916_v46 = vadd.f32 %v915_v42, %v3405_v40  ;;  %v3612_v53 = vpop.f32.mrf.mxu0  ;;  %v3614_v55 = vpop.f32.mrf.mxu1 }
 0x1fe   : > { %v1031_v58 = vmax.f32 %v803_v45, 0.0  ;;  %v1032_v59 = vmax.f32 %v916_v46, 0.0 }
 0x1ff   : > { %2641 = vmatmul.msk.f32.gmra.mxu0 %vm399_vm1, %v3558_v11  ;;  %2674 = vmatmul.msk.f32.gmra.mxu1 %vm399_vm1, %v3558_v11 }
 0x200   : > { %v1176_v54 = vadd.f32 %v1175_v25, %v1031_v58  ;;  %v1213_v5 = vadd.f32 %v1212_v34, %v1032_v59  ;;  %2707 = vmatmul.msk.f32.gmra.mxu2 %vm399_vm1, %v3558_v11  ;;  %2740 = vmatmul.msk.f32.gmra.mxu3 %vm399_vm1, %v3558_v11  ;;  %v3636_v25 = vpop.trf.xlu1 }
 0x203   : > { %v805_v6 = vpop.f32.mrf.mxu2  ;;  %v918_v10 = vpop.f32.mrf.mxu3 }
 0x204   : > { %v806_v12 = vadd.f32 %v805_v6, %v3402_v39  ;;  %v919_v13 = vadd.f32 %v918_v10, %v3405_v40  ;;  %v3628_v22 = vpop.f32.mrf.mxu0  ;;  %v3630_v23 = vpop.f32.mrf.mxu1 }
 0x206   : > { %v1035_v41 = vmax.f32 %v806_v12, 0.0  ;;  %v1036_v42 = vmax.f32 %v919_v13, 0.0 }
 0x207   : > { %2642 = vmatmul.msk.f32.gmra.mxu0 %vm399_vm1, %v3572_v35  ;;  %2675 = vmatmul.msk.f32.gmra.mxu1 %vm399_vm1, %v3572_v35 }
 0x208   : > { %v1177_v11 = vadd.f32 %v1176_v54, %v1035_v41  ;;  %v1214_v34 = vadd.f32 %v1213_v5, %v1036_v42  ;;  %2708 = vmatmul.msk.f32.gmra.mxu2 %vm399_vm1, %v3572_v35  ;;  %2741 = vmatmul.msk.f32.gmra.mxu3 %vm399_vm1, %v3572_v35  ;;  %v3652_v54 = vpop.trf.xlu1  ;;  %v3655_v35 = vperm.slane %v3399_v38, 0  ;;  %v3658_v5 = vperm.slane %v3399_v38, 1 }
 0x20b   : > { %v808_v45 = vpop.f32.mrf.mxu2  ;;  %v921_v46 = vpop.f32.mrf.mxu3 }
 0x20c   : > { %v809_v58 = vadd.f32 %v808_v45, %v3402_v39  ;;  %v922_v59 = vadd.f32 %v921_v46, %v3405_v40  ;;  %v3644_v6 = vpop.f32.mrf.mxu0  ;;  %v3646_v10 = vpop.f32.mrf.mxu1  ;;  %v526_v45 = vadd.f32 %v3394_v36, %v3655_v35  ;;  %v639_v46 = vadd.f32 %v3396_v37, %v3658_v5 }
 0x20d   : > { %v529_v36 = vadd.f32 %v3415_v48, %v3655_v35  ;;  %v642_v37 = vadd.f32 %v3417_v49, %v3658_v5  ;;  %v538_v40 = vadd.f32 %v3445_v19, %v3655_v35 }
 0x20e   : > { %v1039_v12 = vmax.f32 %v809_v58, 0.0  ;;  %v1040_v13 = vmax.f32 %v922_v59, 0.0 }
 0x20f   : > { %2643 = vmatmul.msk.f32.gmra.mxu0 %vm399_vm1, %v3588_v60  ;;  %2676 = vmatmul.msk.f32.gmra.mxu1 %vm399_vm1, %v3588_v60  ;;  %v965_v49 = vmax.f32 %v529_v36, 0.0 }
 0x210   : > { %v3660_v41 = vadd.f32 %v1177_v11, %v1039_v12  ;;  %v3662_v42 = vadd.f32 %v1214_v34, %v1040_v13  ;;  %2709 = vmatmul.msk.f32.gmra.mxu2 %vm399_vm1, %v3588_v60  ;;  %2742 = vmatmul.msk.f32.gmra.mxu3 %vm399_vm1, %v3588_v60  ;;  %v523_v11 = vadd.f32 %v3386_v31, %v3655_v35  ;;  %v961_v60 = vmax.f32 %v526_v45, 0.0 }
 0x211   : > { %v636_v34 = vadd.f32 %v3388_v32, %v3658_v5  ;;  %v962_v13 = vmax.f32 %v639_v46, 0.0  ;;  %v645_v31 = vadd.f32 %v3427_v62, %v3658_v5  ;;  %v3696_v32 = vpop.trf.xlu1  ;;  %v535_v62 = vadd.f32 %v3435_v8, %v3655_v35 }
 0x212   : > { %4500 = vst [vmem:[#allocation19_spill] sm:$0xff] %v3660_v41  ;;  %v957_v48 = vmax.f32 %v523_v11, 0.0  ;;  %v648_v45 = vadd.f32 %v3437_v9, %v3658_v5 }
 0x213   : > { %4501 = vst [vmem:[#allocation20_spill] sm:$0xff] %v3662_v42  ;;  %v3672_v58 = vpop.f32.mrf.mxu2  ;;  %v3674_v38 = vpop.f32.mrf.mxu3  ;;  %v532_v42 = vadd.f32 %v3425_v61, %v3655_v35  ;;  %v958_v41 = vmax.f32 %v636_v34, 0.0  ;;  %v966_v61 = vmax.f32 %v642_v37, 0.0 }
 0x214   : > { %4502 = vst [vmem:[#allocation21_spill] sm:$0xff] %v3674_v38  ;;  %v3680_v59 = vpop.f32.mrf.mxu0  ;;  %v3682_v12 = vpop.f32.mrf.mxu1  ;;  %v1085_v46 = vadd.f32 %v961_v60, %v957_v48  ;;  %v970_v38 = vmax.f32 %v645_v31, 0.0  ;;  %v973_v60 = vmax.f32 %v535_v62, 0.0  ;;  %v660_v62 = vadd.f32 %v3478_v2, %v3658_v5 }
 0x215   : > { %4503 = vst [vmem:[#allocation22_spill] sm:$0xff] %v3680_v59  ;;  %v969_v59 = vmax.f32 %v532_v42, 0.0  ;;  %v541_v42 = vadd.f32 %v3455_v30, %v3655_v35  ;;  %v657_v30 = vadd.f32 %v3467_v51, %v3658_v5 }
 0x216   : > { %4504 = vst [vmem:[#allocation23_spill] sm:$0xff] %v3682_v12  ;;  %v1122_v12 = vadd.f32 %v962_v13, %v958_v41  ;;  %v1086_v37 = vadd.f32 %v1085_v46, %v965_v49  ;;  %v974_v41 = vmax.f32 %v648_v45, 0.0  ;;  %v654_v13 = vadd.f32 %v3457_v33, %v3658_v5 }
 0x217   : > { %2644 = vmatmul.msk.f32.gmra.mxu0 %vm399_vm1, %v3604_v29  ;;  %2677 = vmatmul.msk.f32.gmra.mxu1 %vm399_vm1, %v3604_v29  ;;  %v544_v49 = vadd.f32 %v3465_v50, %v3655_v35 }
 0x218   : > { %2710 = vmatmul.msk.f32.gmra.mxu2 %vm399_vm1, %v3604_v29  ;;  %2743 = vmatmul.msk.f32.gmra.mxu3 %vm399_vm1, %v3604_v29  ;;  %v651_v29 = vadd.f32 %v3447_v20, %v3658_v5  ;;  %v1123_v9 = vadd.f32 %v1122_v12, %v966_v61  ;;  %v1087_v31 = vadd.f32 %v1086_v37, %v969_v59  ;;  %v977_v20 = vmax.f32 %v538_v40, 0.0 }
 0x219   : > { %v3726_v19 = vpop.trf.xlu1  ;;  %v981_v59 = vmax.f32 %v541_v42, 0.0  ;;  %v982_v61 = vmax.f32 %v654_v13, 0.0  ;;  %v547_v40 = vadd.f32 %v3476_v1, %v3655_v35  ;;  %v986_v37 = vmax.f32 %v657_v30, 0.0 }
 0x21a   : > { %v1124_v48 = vadd.f32 %v1123_v9, %v970_v38  ;;  %v978_v12 = vmax.f32 %v651_v29, 0.0  ;;  %v1088_v33 = vadd.f32 %v1087_v31, %v973_v60  ;;  %v985_v29 = vmax.f32 %v544_v49, 0.0 }
 0x21b   : > { %v3706_v11 = vpop.f32.mrf.mxu2  ;;  %v3708_v34 = vpop.f32.mrf.mxu3  ;;  %v550_v60 = vadd.f32 %v3486_v14, %v3655_v35  ;;  %v663_v1 = vadd.f32 %v3488_v15, %v3658_v5  ;;  %v989_v42 = vmax.f32 %v547_v40, 0.0  ;;  %v990_v13 = vmax.f32 %v660_v62, 0.0 }
 0x21c   : > { %v3714_v36 = vpop.f32.mrf.mxu0  ;;  %v3716_v8 = vpop.f32.mrf.mxu1  ;;  %v1125_v38 = vadd.f32 %v1124_v48, %v974_v41  ;;  %v1089_v51 = vadd.f32 %v1088_v33, %v977_v20  ;;  %v553_v31 = vadd.f32 %v3496_v27, %v3655_v35  ;;  %v666_v48 = vadd.f32 %v3498_v28, %v3658_v5 }
 0x21d   : > { %v993_v27 = vmax.f32 %v550_v60, 0.0  ;;  %v556_v28 = vadd.f32 %v3506_v47, %v3655_v35  ;;  %v669_v49 = vadd.f32 %v3508_v52, %v3658_v5  ;;  %v672_v40 = vadd.f32 %v3518_v3, %v3658_v5 }
 0x21e   : > { %v1126_v46 = vadd.f32 %v1125_v38, %v978_v12  ;;  %v1090_v41 = vadd.f32 %v1089_v51, %v981_v59  ;;  %v994_v12 = vmax.f32 %v663_v1, 0.0  ;;  %v997_v38 = vmax.f32 %v553_v31, 0.0 }
 0x21f   : > { %2645 = vmatmul.msk.f32.gmra.mxu0 %vm399_vm1, %v3620_v7  ;;  %2678 = vmatmul.msk.f32.gmra.mxu1 %vm399_vm1, %v3620_v7  ;;  %v998_v59 = vmax.f32 %v666_v48, 0.0  ;;  %v562_v60 = vadd.f32 %v3528_v18, %v3655_v35  ;;  %v678_v18 = vadd.f32 %v3542_v44, %v3658_v5 }
 0x220   : > { %2711 = vmatmul.msk.f32.gmra.mxu2 %vm399_vm1, %v3620_v7  ;;  %2744 = vmatmul.msk.f32.gmra.mxu3 %vm399_vm1, %v3620_v7  ;;  %v1127_v2 = vadd.f32 %v1126_v46, %v982_v61  ;;  %v1091_v20 = vadd.f32 %v1090_v41, %v985_v29  ;;  %v559_v61 = vadd.f32 %v3516_v0, %v3655_v35  ;;  %v1001_v29 = vmax.f32 %v556_v28, 0.0 }
 0x221   : > { %v3760_v14 = vpop.trf.xlu1  ;;  %v675_v0 = vadd.f32 %v3530_v21, %v3658_v5  ;;  %v1009_v48 = vmax.f32 %v562_v60, 0.0 }
 0x222   : > { %v1128_v15 = vadd.f32 %v1127_v2, %v986_v37  ;;  %v1092_v30 = vadd.f32 %v1091_v20, %v989_v42  ;;  %v1002_v37 = vmax.f32 %v669_v49, 0.0  ;;  %v1005_v41 = vmax.f32 %v559_v61, 0.0 }
 0x223   : > { %v3740_v50 = vpop.f32.mrf.mxu2  ;;  %v3742_v45 = vpop.f32.mrf.mxu3  ;;  %v1006_v2 = vmax.f32 %v672_v40, 0.0  ;;  %v1010_v20 = vmax.f32 %v675_v0, 0.0 }
 0x224   : > { %v3744_v9 = vpop.f32.mrf.mxu0  ;;  %v3746_v7 = vpop.f32.mrf.mxu1  ;;  %v1129_v33 = vadd.f32 %v1128_v15, %v990_v13  ;;  %v1093_v46 = vadd.f32 %v1092_v30, %v993_v27  ;;  %v565_v13 = vadd.f32 %v3540_v43, %v3655_v35  ;;  %v568_v15 = vadd.f32 %v3552_v63, %v3655_v35 }
 0x225   : > { %v681_v27 = vadd.f32 %v3554_v4, %v3658_v5  ;;  %v1014_v30 = vmax.f32 %v678_v18, 0.0 }
 0x226   : > { %v1130_v52 = vadd.f32 %v1129_v33, %v994_v12  ;;  %v1094_v1 = vadd.f32 %v1093_v46, %v997_v38  ;;  %v1013_v49 = vmax.f32 %v565_v13, 0.0  ;;  %v684_v33 = vadd.f32 %v3566_v26, %v3658_v5 }
 0x227   : > { %2646 = vmatmul.msk.f32.gmra.mxu0 %vm399_vm1, %v3636_v25  ;;  %2679 = vmatmul.msk.f32.gmra.mxu1 %vm399_vm1, %v3636_v25  ;;  %v1017_v61 = vmax.f32 %v568_v15, 0.0  ;;  %v1018_v40 = vmax.f32 %v681_v27, 0.0  ;;  %v574_v46 = vadd.f32 %v3580_v56, %v3655_v35  ;;  %v577_v56 = vadd.f32 %v3596_v16, %v3655_v35 }
 0x228   : > { %2712 = vmatmul.msk.f32.gmra.mxu2 %vm399_vm1, %v3636_v25  ;;  %2745 = vmatmul.msk.f32.gmra.mxu3 %vm399_vm1, %v3636_v25  ;;  %v1131_v3 = vadd.f32 %v1130_v52, %v998_v59  ;;  %v1095_v21 = vadd.f32 %v1094_v1, %v1001_v29  ;;  %v687_v52 = vadd.f32 %v3582_v57, %v3658_v5  ;;  %v1022_v60 = vmax.f32 %v684_v33, 0.0 }
 0x229   : > { %v3790_v42 = vpop.trf.xlu1  ;;  %v690_v57 = vadd.f32 %v3598_v17, %v3658_v5  ;;  %v693_v13 = vadd.f32 %v3614_v55, %v3658_v5  ;;  %v1029_v17 = vmax.f32 %v577_v56, 0.0  ;;  %v583_v15 = vadd.f32 %v3628_v22, %v3655_v35 }
 0x22a   : > { %v1132_v31 = vadd.f32 %v1131_v3, %v1002_v37  ;;  %v1096_v43 = vadd.f32 %v1095_v21, %v1005_v41  ;;  %v1025_v3 = vmax.f32 %v574_v46, 0.0  ;;  %v1026_v41 = vmax.f32 %v687_v52, 0.0 }
 0x22b   : > { %v3774_v62 = vpop.f32.mrf.mxu2  ;;  %v3776_v25 = vpop.f32.mrf.mxu3  ;;  %v699_v22 = vadd.f32 %v3646_v10, %v3658_v5  ;;  %v4508_v10 = vld [vmem:[#allocation23_spill] sm:$0xff] }
 0x22c   : > { %v3778_v51 = vpop.f32.mrf.mxu0  ;;  %v3780_v47 = vpop.f32.mrf.mxu1  ;;  %v1133_v12 = vadd.f32 %v1132_v31, %v1006_v2  ;;  %v1097_v59 = vadd.f32 %v1096_v43, %v1009_v48  ;;  %v580_v2 = vadd.f32 %v3612_v53, %v3655_v35  ;;  %v696_v53 = vadd.f32 %v3630_v23, %v3658_v5 }
 0x22d   : > { %v812_v23 = vadd.f32 %v3672_v58, %v3402_v39  ;;  %v1042_v56 = vmax.f32 %v699_v22, 0.0  ;;  %v4510_v22 = vld [vmem:[#allocation20_spill] sm:$0xff] }
 0x22e   : > { %v1134_v4 = vadd.f32 %v1133_v12, %v1010_v20  ;;  %v1098_v26 = vadd.f32 %v1097_v59, %v1013_v49  ;;  %v1030_v20 = vmax.f32 %v690_v57, 0.0  ;;  %v1033_v43 = vmax.f32 %v580_v2, 0.0 }
 0x22f   : > { %2647 = vmatmul.msk.f32.gmra.mxu0 %vm399_vm1, %v3652_v54  ;;  %2680 = vmatmul.msk.f32.gmra.mxu1 %vm399_vm1, %v3652_v54  ;;  %v1034_v12 = vmax.f32 %v693_v13, 0.0  ;;  %v1037_v59 = vmax.f32 %v583_v15, 0.0  ;;  %v1043_v57 = vmax.f32 %v812_v23, 0.0  ;;  %v705_v15 = vadd.f32 %v3716_v8, %v3658_v5  ;;  %v4509_v8 = vld [vmem:[#allocation19_spill] sm:$0xff] }
 0x230   : > { %2713 = vmatmul.msk.f32.gmra.mxu2 %vm399_vm1, %v3652_v54  ;;  %2746 = vmatmul.msk.f32.gmra.mxu3 %vm399_vm1, %v3652_v54  ;;  %v571_v54 = vadd.f32 %v3564_v24, %v3655_v35  ;;  %v1135_v29 = vadd.f32 %v1134_v4, %v1014_v30  ;;  %v1099_v0 = vadd.f32 %v1098_v26, %v1017_v61  ;;  %v1038_v4 = vmax.f32 %v696_v53, 0.0  ;;  %v4505_v61 = vld [vmem:[#allocation18_spill] sm:$0xff] }
 0x231   : > { %v3824_v24 = vpop.trf.xlu1  ;;  %v586_v30 = vadd.f32 %v3644_v6, %v3655_v35  ;;  %v4507_v6 = vld [vmem:[#allocation22_spill] sm:$0xff]  ;;  %v702_v26 = vadd.f32 %v4508_v10, %v3658_v5  ;;  %v928_v13 = vadd.f32 %v3708_v34, %v4505_v61  ;;  %v931_v53 = vadd.f32 %v3742_v45, %v4505_v61 }
 0x232   : > { %v1021_v37 = vmax.f32 %v571_v54, 0.0  ;;  %v1136_v1 = vadd.f32 %v1135_v29, %v1018_v40  ;;  %v4506_v40 = vld [vmem:[#allocation21_spill] sm:$0xff]  ;;  %v589_v52 = vadd.f32 %v4507_v6, %v3655_v35  ;;  %v934_v6 = vadd.f32 %v3776_v25, %v4505_v61 }
 0x233   : > { %v3804_v28 = vpop.f32.mrf.mxu2  ;;  %v3806_v44 = vpop.f32.mrf.mxu3  ;;  %v925_v46 = vadd.f32 %v4506_v40, %v4505_v61  ;;  %v1052_v40 = vmax.f32 %v931_v53, 0.0 }
 0x234   : > { %v3812_v38 = vpop.f32.mrf.mxu0  ;;  %v3814_v63 = vpop.f32.mrf.mxu1  ;;  %v1137_v31 = vadd.f32 %v1136_v1, %v1022_v60 }
 0x236   : > { %v1138_v55 = vadd.f32 %v1137_v31, %v1026_v41  ;;  %v1044_v31 = vmax.f32 %v925_v46, 0.0 }
 0x237   : > { %2648 = vmatmul.msk.f32.gmra.mxu0 %vm399_vm1, %v3696_v32  ;;  %2681 = vmatmul.msk.f32.gmra.mxu1 %vm399_vm1, %v3696_v32 }
 0x238   : > { %2714 = vmatmul.msk.f32.gmra.mxu2 %vm399_vm1, %v3696_v32  ;;  %2747 = vmatmul.msk.f32.gmra.mxu3 %vm399_vm1, %v3696_v32  ;;  %v1100_v32 = vadd.f32 %v1099_v0, %v1021_v37  ;;  %v1139_v33 = vadd.f32 %v1138_v55, %v1030_v20  ;;  %v815_v0 = vadd.f32 %v3706_v11, %v3402_v39  ;;  %v1046_v20 = vmax.f32 %v702_v26, 0.0 }
 0x239   : > { %v3854_v49 = vpop.trf.xlu1  ;;  %v818_v11 = vadd.f32 %v3740_v50, %v3402_v39  ;;  %v1048_v50 = vmax.f32 %v928_v13, 0.0  ;;  %v1216_v23 = vadd.f32 %v4510_v22, %v1044_v31  ;;  %v824_v26 = vadd.f32 %v3804_v28, %v3402_v39 }
 0x23a   : > { %v1101_v27 = vadd.f32 %v1100_v32, %v1025_v3  ;;  %v1140_v29 = vadd.f32 %v1139_v33, %v1034_v12  ;;  %v592_v32 = vadd.f32 %v3714_v36, %v3655_v35  ;;  %v1047_v12 = vmax.f32 %v815_v0, 0.0 }
 0x23b   : > { %v3838_v18 = vpop.f32.mrf.mxu2  ;;  %v3840_v21 = vpop.f32.mrf.mxu3 }
 0x23c   : > { %v3842_v16 = vpop.f32.mrf.mxu0  ;;  %v3844_v48 = vpop.f32.mrf.mxu1  ;;  %v1102_v54 = vadd.f32 %v1101_v27, %v1029_v17  ;;  %v1141_v2 = vadd.f32 %v1140_v29, %v1038_v4  ;;  %v1045_v17 = vmax.f32 %v589_v52, 0.0  ;;  %v595_v27 = vadd.f32 %v3744_v9, %v3655_v35 }
 0x23d   : > { %v1049_v45 = vmax.f32 %v592_v32, 0.0  ;;  %v708_v9 = vadd.f32 %v3746_v7, %v3658_v5  ;;  %v1051_v4 = vmax.f32 %v818_v11, 0.0  ;;  %v598_v7 = vadd.f32 %v3778_v51, %v3655_v35 }
 0x23e   : > { %v1103_v58 = vadd.f32 %v1102_v54, %v1033_v43  ;;  %v1142_v55 = vadd.f32 %v1141_v2, %v1042_v56  ;;  %v1179_v43 = vadd.f32 %v4509_v8, %v1043_v57  ;;  %v1053_v46 = vmax.f32 %v595_v27, 0.0 }
 0x23f   : > { %2649 = vmatmul.msk.f32.gmra.mxu0 %vm399_vm1, %v3726_v19  ;;  %2682 = vmatmul.msk.f32.gmra.mxu1 %vm399_vm1, %v3726_v19  ;;  %v1054_v57 = vmax.f32 %v708_v9, 0.0  ;;  %v714_v2 = vadd.f32 %v3814_v63, %v3658_v5  ;;  %v1057_v31 = vmax.f32 %v598_v7, 0.0  ;;  %v604_v11 = vadd.f32 %v3842_v16, %v3655_v35 }
 0x240   : > { %2715 = vmatmul.msk.f32.gmra.mxu2 %vm399_vm1, %v3726_v19  ;;  %2748 = vmatmul.msk.f32.gmra.mxu3 %vm399_vm1, %v3726_v19  ;;  %v1041_v19 = vmax.f32 %v586_v30, 0.0  ;;  %v1104_v41 = vadd.f32 %v1103_v58, %v1037_v59  ;;  %v821_v30 = vadd.f32 %v3774_v62, %v3402_v39  ;;  %v1143_v33 = vadd.f32 %v1142_v55, %v1046_v20 }
 0x241   : > { %v3898_v34 = vpop.trf.xlu1  ;;  %v1050_v59 = vmax.f32 %v705_v15, 0.0  ;;  %v1180_v10 = vadd.f32 %v1179_v43, %v1047_v12  ;;  %v711_v62 = vadd.f32 %v3780_v47, %v3658_v5  ;;  %v1056_v47 = vmax.f32 %v934_v6, 0.0 }
 0x242   : > { %v1105_v36 = vadd.f32 %v1104_v41, %v1041_v19  ;;  %v1217_v19 = vadd.f32 %v1216_v23, %v1048_v50  ;;  %v1055_v25 = vmax.f32 %v821_v30, 0.0  ;;  %v601_v41 = vadd.f32 %v3812_v38, %v3655_v35 }
 0x243   : > { %v3872_v37 = vpop.f32.mrf.mxu2  ;;  %v3874_v60 = vpop.f32.mrf.mxu3  ;;  %v1144_v0 = vadd.f32 %v1143_v33, %v1050_v59  ;;  %v1181_v51 = vadd.f32 %v1180_v10, %v1051_v4  ;;  %v1059_v20 = vmax.f32 %v824_v26, 0.0  ;;  %v937_v38 = vadd.f32 %v3806_v44, %v4505_v61 }
 0x244   : > { %v3878_v1 = vpop.f32.mrf.mxu0  ;;  %v3880_v3 = vpop.f32.mrf.mxu1  ;;  %v1106_v54 = vadd.f32 %v1105_v36, %v1045_v17  ;;  %v1218_v13 = vadd.f32 %v1217_v19, %v1052_v40  ;;  %v1058_v17 = vmax.f32 %v711_v62, 0.0  ;;  %v717_v53 = vadd.f32 %v3844_v48, %v3658_v5 }
 0x245   : > { %v1145_v63 = vadd.f32 %v1144_v0, %v1054_v57  ;;  %v1182_v15 = vadd.f32 %v1181_v51, %v1055_v25  ;;  %v1061_v27 = vmax.f32 %v601_v41, 0.0  ;;  %v1062_v36 = vmax.f32 %v714_v2, 0.0 }
 0x246   : > { %v1107_v56 = vadd.f32 %v1106_v54, %v1049_v45  ;;  %v827_v55 = vadd.f32 %v3838_v18, %v3402_v39  ;;  %v940_v44 = vadd.f32 %v3840_v21, %v4505_v61  ;;  %v1219_v8 = vadd.f32 %v1218_v13, %v1056_v47 }
 0x247   : > { %2650 = vmatmul.msk.f32.gmra.mxu0 %vm399_vm1, %v3760_v14  ;;  %2683 = vmatmul.msk.f32.gmra.mxu1 %vm399_vm1, %v3760_v14  ;;  %v720_v43 = vadd.f32 %v3880_v3, %v3658_v5  ;;  %v1146_v45 = vadd.f32 %v1145_v63, %v1058_v17  ;;  %v1183_v48 = vadd.f32 %v1182_v15, %v1059_v20  ;;  %v1060_v9 = vmax.f32 %v937_v38, 0.0 }
 0x248   : > { %2716 = vmatmul.msk.f32.gmra.mxu2 %vm399_vm1, %v3760_v14  ;;  %2749 = vmatmul.msk.f32.gmra.mxu3 %vm399_vm1, %v3760_v14  ;;  %v1108_v32 = vadd.f32 %v1107_v56, %v1053_v46  ;;  %v1065_v23 = vmax.f32 %v604_v11, 0.0  ;;  %v1066_v18 = vmax.f32 %v717_v53, 0.0  ;;  %v1064_v4 = vmax.f32 %v940_v44, 0.0 }
 0x249   : > { %v3930_v28 = vpop.trf.xlu1  ;;  %v1147_v59 = vadd.f32 %v1146_v45, %v1062_v36  ;;  %v1070_v3 = vmax.f32 %v720_v43, 0.0  ;;  %v1220_v7 = vadd.f32 %v1219_v8, %v1060_v9  ;;  %v830_v62 = vadd.f32 %v3872_v37, %v3402_v39 }
 0x24a   : > { %v1109_v50 = vadd.f32 %v1108_v32, %v1057_v31  ;;  %v943_v26 = vadd.f32 %v3874_v60, %v4505_v61 }
 0x24b   : > { %v3912_v14 = vpop.f32.mrf.mxu2  ;;  %v3914_v52 = vpop.f32.mrf.mxu3  ;;  %v1221_v25 = vadd.f32 %v1220_v7, %v1064_v4  ;;  %v1067_v47 = vmax.f32 %v830_v62, 0.0 }
 0x24c   : > { %v609_v58 = vpop.f32.mrf.mxu0  ;;  %v722_v29 = vpop.f32.mrf.mxu1  ;;  %v1110_v33 = vadd.f32 %v1109_v50, %v1061_v27  ;;  %v833_v0 = vadd.f32 %v3912_v14, %v3402_v39  ;;  %v946_v37 = vadd.f32 %v3914_v52, %v4505_v61 }
 0x24d   : > { %v610_v54 = vadd.f32 %v609_v58, %v3655_v35  ;;  %v723_v21 = vadd.f32 %v722_v29, %v3658_v5  ;;  %v1148_v29 = vadd.f32 %v1147_v59, %v1066_v18 }
 0x24e   : > { %v1111_v58 = vadd.f32 %v1110_v33, %v1065_v23  ;;  %v1071_v11 = vmax.f32 %v833_v0, 0.0  ;;  %v1072_v53 = vmax.f32 %v946_v37, 0.0 }
 0x24f   : > { %2651 = vmatmul.msk.f32.gmra.mxu0 %vm399_vm1, %v3790_v42  ;;  %2684 = vmatmul.msk.f32.gmra.mxu1 %vm399_vm1, %v3790_v42  ;;  %v1073_v19 = vmax.f32 %v610_v54, 0.0  ;;  %v1074_v56 = vmax.f32 %v723_v21, 0.0  ;;  %v1149_v60 = vadd.f32 %v1148_v29, %v1070_v3 }
 0x250   : > { %2717 = vmatmul.msk.f32.gmra.mxu2 %vm399_vm1, %v3790_v42  ;;  %2750 = vmatmul.msk.f32.gmra.mxu3 %vm399_vm1, %v3790_v42  ;;  %v607_v42 = vadd.f32 %v3878_v1, %v3655_v35  ;;  %v1063_v1 = vmax.f32 %v827_v55, 0.0 }
 0x251   : > { %v3958_v10 = vpop.trf.xlu1  ;;  %v1150_v15 = vadd.f32 %v1149_v60, %v1074_v56  ;;  %v2234_v60 = vld [vmem:[%s4006_s27 + $0x178] sm:$0xff] }
 0x252   : > { %v1069_v40 = vmax.f32 %v607_v42, 0.0  ;;  %v1184_v57 = vadd.f32 %v1183_v48, %v1063_v1  ;;  %2301 = vmatpush.msra.mxu2 %v2234_v60 }
 0x253   : > { %v835_v12 = vpop.f32.mrf.mxu2  ;;  %v948_v16 = vpop.f32.mrf.mxu3 }
 0x254   : > { %v612_v30 = vpop.f32.mrf.mxu0  ;;  %v725_v22 = vpop.f32.mrf.mxu1  ;;  %v1112_v41 = vadd.f32 %v1111_v58, %v1069_v40  ;;  %v836_v31 = vadd.f32 %v835_v12, %v3402_v39  ;;  %v949_v17 = vadd.f32 %v948_v16, %v4505_v61  ;;  %v1185_v12 = vadd.f32 %v1184_v57, %v1067_v47 }
 0x255   : > { %v613_v46 = vadd.f32 %v612_v30, %v3655_v35  ;;  %v726_v6 = vadd.f32 %v725_v22, %v3658_v5 }
 0x256   : > { %v1113_v63 = vadd.f32 %v1112_v41, %v1073_v19  ;;  %v1075_v50 = vmax.f32 %v836_v31, 0.0  ;;  %v1076_v45 = vmax.f32 %v949_v17, 0.0  ;;  %v1186_v30 = vadd.f32 %v1185_v12, %v1071_v11  ;;  %v2218_v12 = vld [vmem:[%s4006_s27 + $0xf8] sm:$0xff] }
 0x257   : > { %2652 = vmatmul.msk.f32.gmra.mxu0 %vm399_vm1, %v3824_v24  ;;  %2685 = vmatmul.msk.f32.gmra.mxu1 %vm399_vm1, %v3824_v24  ;;  %v1077_v2 = vmax.f32 %v613_v46, 0.0  ;;  %v1078_v51 = vmax.f32 %v726_v6, 0.0 }
 0x258   : > { %2718 = vmatmul.msk.f32.gmra.mxu2 %vm399_vm1, %v3824_v24  ;;  %2751 = vmatmul.msk.f32.gmra.mxu3 %vm399_vm1, %v3824_v24  ;;  %v1068_v24 = vmax.f32 %v943_v26, 0.0  ;;  %v1187_v1 = vadd.f32 %v1186_v30, %v1075_v50 }
 0x259   : > { %v1114_v55 = vadd.f32 %v1113_v63, %v1077_v2  ;;  %v1151_v44 = vadd.f32 %v1150_v15, %v1078_v51  ;;  %v3982_v43 = vpop.trf.xlu1  ;;  %2281 = vmatpush.msra.mxu1 %v2218_v12 }
 0x25a   : > { %v1222_v16 = vadd.f32 %v1221_v25, %v1068_v24 }
 0x25b   : > { %v838_v13 = vpop.f32.mrf.mxu2  ;;  %v951_v32 = vpop.f32.mrf.mxu3 }
 0x25c   : > { %v615_v20 = vpop.f32.mrf.mxu0  ;;  %v728_v38 = vpop.f32.mrf.mxu1  ;;  %v839_v27 = vadd.f32 %v838_v13, %v3402_v39  ;;  %v952_v36 = vadd.f32 %v951_v32, %v4505_v61  ;;  %v1223_v22 = vadd.f32 %v1222_v16, %v1072_v53 }
 0x25d   : > { %v616_v14 = vadd.f32 %v615_v20, %v3655_v35  ;;  %v729_v52 = vadd.f32 %v728_v38, %v3658_v5 }
 0x25e   : > { %v1079_v23 = vmax.f32 %v839_v27, 0.0  ;;  %v1080_v18 = vmax.f32 %v952_v36, 0.0  ;;  %v1224_v4 = vadd.f32 %v1223_v22, %v1076_v45  ;;  %v2250_v27 = vld [vmem:[%s4006_s27 + $0x1f8] sm:$0xff] }
 0x25f   : > { %v1081_v8 = vmax.f32 %v616_v14, 0.0  ;;  %v1082_v42 = vmax.f32 %v729_v52, 0.0  ;;  %2653 = vmatmul.msk.f32.gmra.mxu0 %vm399_vm1, %v3854_v49  ;;  %2686 = vmatmul.msk.f32.gmra.mxu1 %vm399_vm1, %v3854_v49 }
 0x260   : > { %2719 = vmatmul.msk.f32.gmra.mxu2 %vm399_vm1, %v3854_v49  ;;  %2752 = vmatmul.msk.f32.gmra.mxu3 %vm399_vm1, %v3854_v49  ;;  %v1188_v62 = vadd.f32 %v1187_v1, %v1079_v23  ;;  %v1225_v26 = vadd.f32 %v1224_v4, %v1080_v18 }
 0x261   : > { %v1115_v48 = vadd.f32 %v1114_v55, %v1081_v8  ;;  %v1152_v9 = vadd.f32 %v1151_v44, %v1082_v42  ;;  %v3998_v57 = vpop.trf.xlu1  ;;  %2321 = vmatpush.msra.mxu3 %v2250_v27  ;;  %v2202_v42 = vld [vmem:[%s4006_s27 + $0x78] sm:$0xff]  ;;  %v2232_v27 = vld [vmem:[%s4006_s27 + $0x168] sm:$0xff] }
 0x262   : > { %2261 = vmatpush.msra.mxu0 %v2202_v42 }
 0x263   : > { %v1116_v54 = vrot.slane %v1115_v48, 4  ;;  %v1153_v21 = vrot.slane %v1152_v9, 4  ;;  %v841_v33 = vpop.f32.mrf.mxu2  ;;  %v954_v59 = vpop.f32.mrf.mxu3 }
 0x264   : > { %v842_v40 = vadd.f32 %v841_v33, %v3402_v39  ;;  %v955_v3 = vadd.f32 %v954_v59, %v4505_v61  ;;  %v3990_v46 = vpop.f32.mrf.mxu0  ;;  %v3992_v6 = vpop.f32.mrf.mxu1 }
 0x265   : > { %v1117_v49 = vadd.f32 %v1116_v54, %v1115_v48  ;;  %v1154_v7 = vadd.f32 %v1153_v21, %v1152_v9  ;;  %v1251_v9 = vlaneseq }
 0x266   : > { %v1083_v58 = vmax.f32 %v842_v40, 0.0  ;;  %v1084_v29 = vmax.f32 %v955_v3, 0.0 }
 0x267   : > { %v1118_v19 = vrot.slane %v1117_v49, 2  ;;  %v1155_v56 = vrot.slane %v1154_v7, 2  ;;  %2654 = vmatmul.msk.f32.gmra.mxu0 %vm399_vm1, %v3898_v34  ;;  %2687 = vmatmul.msk.f32.gmra.mxu1 %vm399_vm1, %v3898_v34  ;;  %vm4039_vm5 = vcmp.lt.s32.totalorder %v1251_v9, 512 }
 0x268   : > { %v1189_v25 = vadd.f32 %v1188_v62, %v1083_v58  ;;  %v1226_v0 = vadd.f32 %v1225_v26, %v1084_v29  ;;  %2720 = vmatmul.msk.f32.gmra.mxu2 %vm399_vm1, %v3898_v34  ;;  %2753 = vmatmul.msk.f32.gmra.mxu3 %vm399_vm1, %v3898_v34  ;;  %v2233_v58 = vld [vmem:[%s4006_s27 + $0x170] sm:$0xff] }
 0x269   : > { %v1119_v37 = vadd.f32 %v1118_v19, %v1117_v49  ;;  %v1156_v41 = vadd.f32 %v1155_v56, %v1154_v7  ;;  %v4022_v36 = vpop.trf.xlu1  ;;  %2302 = vmatpush.msra.mxu2 %v2233_v58 }
 0x26a   : > { %v1190_v2 = vrot.slane %v1189_v25, 4  ;;  %v1227_v51 = vrot.slane %v1226_v0, 4 }
 0x26b   : > { %v1120_v13 = vrot.slane %v1119_v37, 1  ;;  %v1157_v32 = vrot.slane %v1156_v41, 1  ;;  %v1682_v47 = vpop.f32.mrf.mxu2  ;;  %v1795_v24 = vpop.f32.mrf.mxu3  ;;  %2303 = vmatpush.msra.mxu2 %v2232_v27 }
 0x26c   : > { %v1191_v31 = vadd.f32 %v1190_v2, %v1189_v25  ;;  %v1228_v17 = vadd.f32 %v1227_v51, %v1226_v0  ;;  %v4009_v20 = vpop.f32.mrf.mxu0  ;;  %v4011_v34 = vpop.f32.mrf.mxu1  ;;  %v1683_v44 = vadd.f32 %v1682_v47, %v3402_v39  ;;  %v1796_v8 = vadd.f32 %v1795_v24, %v4505_v61  ;;  %v2217_v47 = vld [vmem:[%s4006_s27 + $0xf0] sm:$0xff] }
 0x26d   : > { %v1158_v38 = vadd.f32 %v1157_v32, %v1156_v41  ;;  %v1121_v14 = vadd.f32 %v1120_v13, %v1119_v37  ;;  %v2249_v13 = vld [vmem:[%s4006_s27 + $0x1f0] sm:$0xff]  ;;  %2282 = vmatpush.msra.mxu1 %v2217_v47 }
 0x26e   : > { %v1192_v63 = vrot.slane %v1191_v31, 2  ;;  %v1229_v15 = vrot.slane %v1228_v17, 2  ;;  %v1893_v21 = vmax.f32 %v1683_v44, 0.0  ;;  %v1894_v33 = vmax.f32 %v1796_v8, 0.0  ;;  %2322 = vmatpush.msra.mxu3 %v2249_v13  ;;  %v2201_v32 = vld [vmem:[%s4006_s27 + $0x70] sm:$0xff] }
 0x26f   : > { %v1241_v52 = vrot.slane %v1158_v38, 7  ;;  %2655 = vmatmul.msk.f32.gmra.mxu0 %vm399_vm1, %v3930_v28  ;;  %2688 = vmatmul.msk.f32.gmra.mxu1 %vm399_vm1, %v3930_v28 }
 0x270   : > { %v1193_v11 = vadd.f32 %v1192_v63, %v1191_v31  ;;  %v1230_v53 = vadd.f32 %v1229_v15, %v1228_v17  ;;  %2721 = vmatmul.msk.f32.gmra.mxu2 %vm399_vm1, %v3930_v28  ;;  %2754 = vmatmul.msk.f32.gmra.mxu3 %vm399_vm1, %v3930_v28 }
 0x271   : > { %v1245_v55 = vsel %vm1244_vm2, %v1121_v14, %v1241_v52  ;;  %v4050_v29 = vpop.trf.xlu1  ;;  %2262 = vmatpush.msra.mxu0 %v2201_v32  ;;  %v1570_v32 = vadd.f32 %v3992_v6, %v3658_v5  ;;  %v2247_v6 = vld [vmem:[%s4006_s27 + $0x1e0] sm:$0xff] }
 0x272   : > { %v1194_v16 = vrot.slane %v1193_v11, 1  ;;  %v1231_v50 = vrot.slane %v1230_v53, 1 }
 0x273   : > { %v1685_v45 = vpop.f32.mrf.mxu2  ;;  %v1798_v48 = vpop.f32.mrf.mxu3 }
 0x274   : > { %v1195_v28 = vadd.f32 %v1194_v16, %v1193_v11  ;;  %v1232_v30 = vadd.f32 %v1231_v50, %v1230_v53  ;;  %v1686_v22 = vadd.f32 %v1685_v45, %v3402_v39  ;;  %v1799_v23 = vadd.f32 %v1798_v48, %v4505_v61  ;;  %v4031_v18 = vpop.f32.mrf.mxu0  ;;  %v4033_v54 = vpop.f32.mrf.mxu1 }
 0x275   : > { %v1463_v47 = vadd.f32 %v4031_v18, %v3655_v35 }
 0x276   : > { %v1242_v59 = vrot.slane %v1195_v28, 6  ;;  %v1243_v1 = vrot.slane %v1232_v30, 5  ;;  %v1897_v4 = vmax.f32 %v1686_v22, 0.0  ;;  %v1898_v40 = vmax.f32 %v1799_v23, 0.0  ;;  %v2248_v28 = vld [vmem:[%s4006_s27 + $0x1e8] sm:$0xff] }
 0x277   : > { %2656 = vmatmul.msk.f32.gmra.mxu0 %vm399_vm1, %v3958_v10  ;;  %2689 = vmatmul.msk.f32.gmra.mxu1 %vm399_vm1, %v3958_v10  ;;  %v2200_v30 = vld [vmem:[%s4006_s27 + $0x68] sm:$0xff] }
 0x278   : > { %v1247_v49 = vsel %vm1246_vm3, %v1242_v59, %v1243_v1  ;;  %v2093_v7 = vadd.f32 %v1897_v4, %v1893_v21  ;;  %v2130_v62 = vadd.f32 %v1898_v40, %v1894_v33  ;;  %2722 = vmatmul.msk.f32.gmra.mxu2 %vm399_vm1, %v3958_v10  ;;  %2755 = vmatmul.msk.f32.gmra.mxu3 %vm399_vm1, %v3958_v10  ;;  %v2216_v22 = vld [vmem:[%s4006_s27 + $0xe8] sm:$0xff] }
 0x279   : > { %v1249_v26 = vsel %vm1248_vm4, %v1245_v55, %v1247_v49  ;;  %2323 = vmatpush.msra.mxu3 %v2248_v28  ;;  %2263 = vmatpush.msra.mxu0 %v2200_v30 }
 0x27a   : > { %1255 = vst.msk [vmem:[#allocation2] ss:$2 sm:$0xf] %vm4039_vm5, %v1249_v26  ;;  %2283 = vmatpush.msra.mxu1 %v2216_v22 }
 0x27b   : > { %v1688_v19 = vpop.f32.mrf.mxu2  ;;  %v1801_v56 = vpop.f32.mrf.mxu3  ;;  %2324 = vmatpush.msra.mxu3 %v2247_v6 }
 0x27c   : > { %v1689_v25 = vadd.f32 %v1688_v19, %v3402_v39  ;;  %v1802_v0 = vadd.f32 %v1801_v56, %v4505_v61  ;;  %v4056_v37 = vpop.f32.mrf.mxu0  ;;  %v4058_v10 = vpop.f32.mrf.mxu1 }
 0x27e   : > { %v1901_v41 = vmax.f32 %v1689_v25, 0.0  ;;  %v1902_v60 = vmax.f32 %v1802_v0, 0.0 }
 0x27f   : > { %2657 = vmatmul.msk.f32.gmra.mxu0 %vm399_vm1, %v3982_v43  ;;  %2690 = vmatmul.msk.f32.gmra.mxu1 %vm399_vm1, %v3982_v43 }
 0x280   : > { %v2094_v2 = vadd.f32 %v2093_v7, %v1901_v41  ;;  %v2131_v51 = vadd.f32 %v2130_v62, %v1902_v60  ;;  %2723 = vmatmul.msk.f32.gmra.mxu2 %vm399_vm1, %v3982_v43  ;;  %2756 = vmatmul.msk.f32.gmra.mxu3 %vm399_vm1, %v3982_v43  ;;  %v4077_v43 = vpop.trf.xlu1  ;;  %v2231_v62 = vld [vmem:[%s4006_s27 + $0x160] sm:$0xff]  ;;  %v1460_v60 = vadd.f32 %v4009_v20, %v3655_v35 }
 0x281   : > { %2304 = vmatpush.msra.mxu2 %v2231_v62 }
 0x283   : > { %v1691_v24 = vpop.f32.mrf.mxu2  ;;  %v1804_v31 = vpop.f32.mrf.mxu3 }
 0x284   : > { %v1692_v17 = vadd.f32 %v1691_v24, %v3402_v39  ;;  %v1805_v38 = vadd.f32 %v1804_v31, %v4505_v61  ;;  %v4073_v63 = vpop.f32.mrf.mxu0  ;;  %v4075_v15 = vpop.f32.mrf.mxu1  ;;  %v1576_v24 = vadd.f32 %v4033_v54, %v3658_v5  ;;  %v1466_v54 = vadd.f32 %v4056_v37, %v3655_v35 }
 0x285   : > { %v1579_v31 = vadd.f32 %v4058_v10, %v3658_v5  ;;  %v1582_v37 = vadd.f32 %v4075_v15, %v3658_v5 }
 0x286   : > { %v1905_v14 = vmax.f32 %v1692_v17, 0.0  ;;  %v1906_v52 = vmax.f32 %v1805_v38, 0.0  ;;  %v2199_v17 = vld [vmem:[%s4006_s27 + $0x60] sm:$0xff] }
 0x287   : > { %2658 = vmatmul.msk.f32.gmra.mxu0 %vm399_vm1, %v3998_v57  ;;  %2691 = vmatmul.msk.f32.gmra.mxu1 %vm399_vm1, %v3998_v57  ;;  %v2215_v38 = vld [vmem:[%s4006_s27 + $0xe0] sm:$0xff] }
 0x288   : > { %v2095_v11 = vadd.f32 %v2094_v2, %v1905_v14  ;;  %v2132_v53 = vadd.f32 %v2131_v51, %v1906_v52  ;;  %2724 = vmatmul.msk.f32.gmra.mxu2 %vm399_vm1, %v3998_v57  ;;  %2757 = vmatmul.msk.f32.gmra.mxu3 %vm399_vm1, %v3998_v57  ;;  %v4102_v9 = vpop.trf.xlu1  ;;  %v1457_v2 = vadd.f32 %v3990_v46, %v3655_v35  ;;  %v1892_v52 = vmax.f32 %v1570_v32, 0.0 }
 0x289   : > { %2264 = vmatpush.msra.mxu0 %v2199_v17  ;;  %2284 = vmatpush.msra.mxu1 %v2215_v38 }
 0x28a   : > { %v1891_v14 = vmax.f32 %v1457_v2, 0.0 }
 0x28b   : > { %v1694_v55 = vpop.f32.mrf.mxu2  ;;  %v1807_v44 = vpop.f32.mrf.mxu3 }
 0x28c   : > { %v1695_v8 = vadd.f32 %v1694_v55, %v3402_v39  ;;  %v1808_v42 = vadd.f32 %v1807_v44, %v4505_v61  ;;  %v4090_v12 = vpop.f32.mrf.mxu0  ;;  %v4092_v16 = vpop.f32.mrf.mxu1  ;;  %v1469_v55 = vadd.f32 %v4073_v63, %v3655_v35 }
 0x28d   : > { %v1472_v28 = vadd.f32 %v4090_v12, %v3655_v35  ;;  %v1585_v30 = vadd.f32 %v4092_v16, %v3658_v5 }
 0x28e   : > { %v1909_v50 = vmax.f32 %v1695_v8, 0.0  ;;  %v1910_v45 = vmax.f32 %v1808_v42, 0.0 }
 0x28f   : > { %2659 = vmatmul.msk.f32.gmra.mxu0 %vm399_vm1, %v4022_v36  ;;  %2692 = vmatmul.msk.f32.gmra.mxu1 %vm399_vm1, %v4022_v36 }
 0x290   : > { %v2096_v57 = vadd.f32 %v2095_v11, %v1909_v50  ;;  %v2133_v48 = vadd.f32 %v2132_v53, %v1910_v45  ;;  %2725 = vmatmul.msk.f32.gmra.mxu2 %vm399_vm1, %v4022_v36  ;;  %2758 = vmatmul.msk.f32.gmra.mxu3 %vm399_vm1, %v4022_v36  ;;  %v4122_v26 = vpop.trf.xlu1  ;;  %v1899_v11 = vmax.f32 %v1463_v47, 0.0  ;;  %v1900_v53 = vmax.f32 %v1576_v24, 0.0 }
 0x293   : > { %v1697_v23 = vpop.f32.mrf.mxu2  ;;  %v1810_v21 = vpop.f32.mrf.mxu3 }
 0x294   : > { %v1698_v33 = vadd.f32 %v1697_v23, %v3402_v39  ;;  %v1811_v59 = vadd.f32 %v1810_v21, %v4505_v61  ;;  %v4109_v1 = vpop.f32.mrf.mxu0  ;;  %v4111_v4 = vpop.f32.mrf.mxu1 }
 0x295   : > { %v1475_v16 = vadd.f32 %v4109_v1, %v3655_v35 }
 0x296   : > { %v1913_v36 = vmax.f32 %v1698_v33, 0.0  ;;  %v1914_v40 = vmax.f32 %v1811_v59, 0.0  ;;  %v1907_v33 = vmax.f32 %v1469_v55, 0.0  ;;  %v1908_v59 = vmax.f32 %v1582_v37, 0.0 }
 0x297   : > { %2660 = vmatmul.msk.f32.gmra.mxu0 %vm399_vm1, %v4050_v29  ;;  %2693 = vmatmul.msk.f32.gmra.mxu1 %vm399_vm1, %v4050_v29 }
 0x298   : > { %v2097_v49 = vadd.f32 %v2096_v57, %v1913_v36  ;;  %v2134_v7 = vadd.f32 %v2133_v48, %v1914_v40  ;;  %2726 = vmatmul.msk.f32.gmra.mxu2 %vm399_vm1, %v4050_v29  ;;  %2759 = vmatmul.msk.f32.gmra.mxu3 %vm399_vm1, %v4050_v29  ;;  %v1573_v29 = vadd.f32 %v4011_v34, %v3658_v5  ;;  %v1895_v34 = vmax.f32 %v1460_v60, 0.0  ;;  %v4167_v15 = vpop.trf.xlu1 }
 0x299   : > { %v1903_v57 = vmax.f32 %v1466_v54, 0.0  ;;  %v1904_v48 = vmax.f32 %v1579_v31, 0.0  ;;  %v1588_v40 = vadd.f32 %v4111_v4, %v3658_v5  ;;  %v2246_v31 = vld [vmem:[%s4006_s27 + $0x1d8] sm:$0xff] }
 0x29a   : > { %v1896_v18 = vmax.f32 %v1573_v29, 0.0  ;;  %v2019_v50 = vadd.f32 %v1895_v34, %v1891_v14  ;;  %2325 = vmatpush.msra.mxu3 %v2246_v31 }
 0x29b   : > { %v1700_v58 = vpop.f32.mrf.mxu2  ;;  %v1813_v19 = vpop.f32.mrf.mxu3  ;;  %v1916_v4 = vmax.f32 %v1588_v40, 0.0 }
 0x29c   : > { %v1701_v56 = vadd.f32 %v1700_v58, %v3402_v39  ;;  %v1814_v25 = vadd.f32 %v1813_v19, %v4505_v61  ;;  %v4126_v0 = vpop.f32.mrf.mxu0  ;;  %v4128_v41 = vpop.f32.mrf.mxu1  ;;  %v2056_v45 = vadd.f32 %v1896_v18, %v1892_v52  ;;  %v2020_v23 = vadd.f32 %v2019_v50, %v1899_v11  ;;  %v2198_v11 = vld [vmem:[%s4006_s27 + $0x58] sm:$0xff] }
 0x29d   : > { %v1911_v58 = vmax.f32 %v1472_v28, 0.0  ;;  %v1912_v19 = vmax.f32 %v1585_v30, 0.0  ;;  %2265 = vmatpush.msra.mxu0 %v2198_v11 }
 0x29e   : > { %v1917_v51 = vmax.f32 %v1701_v56, 0.0  ;;  %v1918_v13 = vmax.f32 %v1814_v25, 0.0  ;;  %v2057_v21 = vadd.f32 %v2056_v45, %v1900_v53  ;;  %v1478_v56 = vadd.f32 %v4126_v0, %v3655_v35  ;;  %v2214_v53 = vld [vmem:[%s4006_s27 + $0xd8] sm:$0xff] }
 0x29f   : > { %2661 = vmatmul.msk.f32.gmra.mxu0 %vm399_vm1, %v4077_v43  ;;  %2694 = vmatmul.msk.f32.gmra.mxu1 %vm399_vm1, %v4077_v43  ;;  %v1591_v25 = vadd.f32 %v4128_v41, %v3658_v5 }
 0x2a0   : > { %v2098_v46 = vadd.f32 %v2097_v49, %v1917_v51  ;;  %v2135_v20 = vadd.f32 %v2134_v7, %v1918_v13  ;;  %2727 = vmatmul.msk.f32.gmra.mxu2 %vm399_vm1, %v4077_v43  ;;  %2760 = vmatmul.msk.f32.gmra.mxu3 %vm399_vm1, %v4077_v43  ;;  %v2230_v49 = vld [vmem:[%s4006_s27 + $0x158] sm:$0xff]  ;;  %v2021_v7 = vadd.f32 %v2020_v23, %v1903_v57  ;;  %v1915_v13 = vmax.f32 %v1475_v16, 0.0  ;;  %v4204_v54 = vpop.trf.xlu1 }
 0x2a1   : > { %v2058_v62 = vadd.f32 %v2057_v21, %v1904_v48  ;;  %2305 = vmatpush.msra.mxu2 %v2230_v49  ;;  %v1919_v41 = vmax.f32 %v1478_v56, 0.0  ;;  %v1920_v6 = vmax.f32 %v1591_v25, 0.0  ;;  %2285 = vmatpush.msra.mxu1 %v2214_v53 }
 0x2a2   : > { %v2022_v29 = vadd.f32 %v2021_v7, %v1907_v33 }
 0x2a3   : > { %v1703_v27 = vpop.f32.mrf.mxu2  ;;  %v1816_v43 = vpop.f32.mrf.mxu3  ;;  %v2059_v2 = vadd.f32 %v2058_v62, %v1908_v59 }
 0x2a4   : > { %v1704_v44 = vadd.f32 %v1703_v27, %v3402_v39  ;;  %v1817_v10 = vadd.f32 %v1816_v43, %v4505_v61  ;;  %v1480_v8 = vpop.f32.mrf.mxu0  ;;  %v1593_v42 = vpop.f32.mrf.mxu1  ;;  %v2023_v24 = vadd.f32 %v2022_v29, %v1911_v58  ;;  %v2229_v58 = vld [vmem:[%s4006_s27 + $0x150] sm:$0xff] }
 0x2a5   : > { %v1481_v32 = vadd.f32 %v1480_v8, %v3655_v35  ;;  %v1594_v47 = vadd.f32 %v1593_v42, %v3658_v5  ;;  %2306 = vmatpush.msra.mxu2 %v2229_v58 }
 0x2a6   : > { %v1921_v63 = vmax.f32 %v1704_v44, 0.0  ;;  %v1922_v22 = vmax.f32 %v1817_v10, 0.0  ;;  %v2024_v17 = vadd.f32 %v2023_v24, %v1915_v13 }
 0x2a7   : > { %2662 = vmatmul.msk.f32.gmra.mxu0 %vm399_vm1, %v4102_v9  ;;  %2695 = vmatmul.msk.f32.gmra.mxu1 %vm399_vm1, %v4102_v9  ;;  %v1923_v14 = vmax.f32 %v1481_v32, 0.0  ;;  %v1924_v52 = vmax.f32 %v1594_v47, 0.0 }
 0x2a8   : > { %v4173_v36 = vadd.f32 %v2098_v46, %v1921_v63  ;;  %v4175_v12 = vadd.f32 %v2135_v20, %v1922_v22  ;;  %2728 = vmatmul.msk.f32.gmra.mxu2 %vm399_vm1, %v4102_v9  ;;  %2761 = vmatmul.msk.f32.gmra.mxu3 %vm399_vm1, %v4102_v9  ;;  %v2060_v46 = vadd.f32 %v2059_v2, %v1912_v19  ;;  %v1324_v19 = vpop.trf.xlu1 }
 0x2a9   : > { %v2025_v55 = vadd.f32 %v2024_v17, %v1919_v41  ;;  %v2197_v41 = vld [vmem:[%s4006_s27 + $0x50] sm:$0xff] }
 0x2aa   : > { %v2061_v38 = vadd.f32 %v2060_v46, %v1916_v4  ;;  %v2245_v46 = vld [vmem:[%s4006_s27 + $0x1d0] sm:$0xff]  ;;  %2266 = vmatpush.msra.mxu0 %v2197_v41 }
 0x2ab   : > { %v1706_v60 = vpop.f32.mrf.mxu2  ;;  %v1819_v9 = vpop.f32.mrf.mxu3  ;;  %v2026_v48 = vadd.f32 %v2025_v55, %v1923_v14  ;;  %2326 = vmatpush.msra.mxu3 %v2245_v46  ;;  %v2227_v46 = vld [vmem:[%s4006_s27 + $0x140] sm:$0xff] }
 0x2ac   : > { %v1483_v1 = vpop.f32.mrf.mxu0  ;;  %v1596_v51 = vpop.f32.mrf.mxu1  ;;  %v1707_v0 = vadd.f32 %v1706_v60, %v3402_v39  ;;  %v1820_v20 = vadd.f32 %v1819_v9, %v4505_v61  ;;  %v2062_v37 = vadd.f32 %v2061_v38, %v1920_v6  ;;  %v2213_v6 = vld [vmem:[%s4006_s27 + $0xd0] sm:$0xff] }
 0x2ad   : > { %v1484_v34 = vadd.f32 %v1483_v1, %v3655_v35  ;;  %v1597_v18 = vadd.f32 %v1596_v51, %v3658_v5  ;;  %2286 = vmatpush.msra.mxu1 %v2213_v6 }
 0x2ae   : > { %v1925_v27 = vmax.f32 %v1707_v0, 0.0  ;;  %v1926_v43 = vmax.f32 %v1820_v20, 0.0  ;;  %v2063_v28 = vadd.f32 %v2062_v37, %v1924_v52 }
 0x2af   : > { %2663 = vmatmul.msk.f32.gmra.mxu0 %vm399_vm1, %v4122_v26  ;;  %2696 = vmatmul.msk.f32.gmra.mxu1 %vm399_vm1, %v4122_v26  ;;  %v1927_v44 = vmax.f32 %v1484_v34, 0.0  ;;  %v1928_v10 = vmax.f32 %v1597_v18, 0.0 }
 0x2b0   : > { %2729 = vmatmul.msk.f32.gmra.mxu2 %vm399_vm1, %v4122_v26  ;;  %2762 = vmatmul.msk.f32.gmra.mxu3 %vm399_vm1, %v4122_v26  ;;  %v2100_v22 = vadd.f32 %v4173_v36, %v1925_v27  ;;  %v2137_v23 = vadd.f32 %v4175_v12, %v1926_v43  ;;  %v1325_v27 = vpop.trf.xlu1 }
 0x2b1   : > { %v2027_v59 = vadd.f32 %v2026_v48, %v1927_v44  ;;  %v2064_v16 = vadd.f32 %v2063_v28, %v1928_v10 }
 0x2b3   : > { %v1709_v8 = vpop.f32.mrf.mxu2  ;;  %v1822_v26 = vpop.f32.mrf.mxu3 }
 0x2b4   : > { %v1710_v42 = vadd.f32 %v1709_v8, %v3402_v39  ;;  %v1823_v50 = vadd.f32 %v1822_v26, %v4505_v61  ;;  %v1486_v45 = vpop.f32.mrf.mxu0  ;;  %v1599_v57 = vpop.f32.mrf.mxu1  ;;  %v2228_v26 = vld [vmem:[%s4006_s27 + $0x148] sm:$0xff] }
 0x2b5   : > { %v1487_v30 = vadd.f32 %v1486_v45, %v3655_v35  ;;  %v1600_v63 = vadd.f32 %v1599_v57, %v3658_v5  ;;  %2307 = vmatpush.msra.mxu2 %v2228_v26 }
 0x2b6   : > { %v1929_v21 = vmax.f32 %v1710_v42, 0.0  ;;  %v1930_v33 = vmax.f32 %v1823_v50, 0.0 }
 0x2b7   : > { %v1931_v40 = vmax.f32 %v1487_v30, 0.0  ;;  %v1932_v49 = vmax.f32 %v1600_v63, 0.0  ;;  %2664 = vmatmul.msk.f32.gmra.mxu0 %vm399_vm1, %v4167_v15  ;;  %2697 = vmatmul.msk.f32.gmra.mxu1 %vm399_vm1, %v4167_v15 }
 0x2b8   : > { %v2101_v7 = vadd.f32 %v2100_v22, %v1929_v21  ;;  %v2138_v62 = vadd.f32 %v2137_v23, %v1930_v33  ;;  %2730 = vmatmul.msk.f32.gmra.mxu2 %vm399_vm1, %v4167_v15  ;;  %2763 = vmatmul.msk.f32.gmra.mxu3 %vm399_vm1, %v4167_v15 }
 0x2b9   : > { %v2028_v36 = vadd.f32 %v2027_v59, %v1931_v40  ;;  %v2065_v12 = vadd.f32 %v2064_v16, %v1932_v49  ;;  %v1326_v40 = vpop.trf.xlu1  ;;  %v2244_v49 = vld [vmem:[%s4006_s27 + $0x1c8] sm:$0xff]  ;;  %2308 = vmatpush.msra.mxu2 %v2227_v46 }
 0x2ba   : > { %2327 = vmatpush.msra.mxu3 %v2244_v49 }
 0x2bb   : > { %v1712_v56 = vpop.f32.mrf.mxu2  ;;  %v1825_v25 = vpop.f32.mrf.mxu3 }
 0x2bc   : > { %v1713_v60 = vadd.f32 %v1712_v56, %v3402_v39  ;;  %v1826_v9 = vadd.f32 %v1825_v25, %v4505_v61  ;;  %v1489_v29 = vpop.f32.mrf.mxu0  ;;  %v1602_v2 = vpop.f32.mrf.mxu1 }
 0x2bd   : > { %v1490_v1 = vadd.f32 %v1489_v29, %v3655_v35  ;;  %v1603_v51 = vadd.f32 %v1602_v2, %v3658_v5 }
 0x2be   : > { %v1933_v15 = vmax.f32 %v1713_v60, 0.0  ;;  %v1934_v13 = vmax.f32 %v1826_v9, 0.0 }
 0x2bf   : > { %v1935_v4 = vmax.f32 %v1490_v1, 0.0  ;;  %v1936_v32 = vmax.f32 %v1603_v51, 0.0  ;;  %2665 = vmatmul.msk.f32.gmra.mxu0 %vm399_vm1, %v4204_v54  ;;  %2698 = vmatmul.msk.f32.gmra.mxu1 %vm399_vm1, %v4204_v54 }
 0x2c0   : > { %v2102_v47 = vadd.f32 %v2101_v7, %v1933_v15  ;;  %v2139_v24 = vadd.f32 %v2138_v62, %v1934_v13  ;;  %2731 = vmatmul.msk.f32.gmra.mxu2 %vm399_vm1, %v4204_v54  ;;  %2764 = vmatmul.msk.f32.gmra.mxu3 %vm399_vm1, %v4204_v54 }
 0x2c1   : > { %v2029_v0 = vadd.f32 %v2028_v36, %v1935_v4  ;;  %v2066_v20 = vadd.f32 %v2065_v12, %v1936_v32  ;;  %v2196_v36 = vld [vmem:[%s4006_s27 + $0x48] sm:$0xff] }
 0x2c2   : > { %v2212_v12 = vld [vmem:[%s4006_s27 + $0xc8] sm:$0xff]  ;;  %2267 = vmatpush.msra.mxu0 %v2196_v36 }
 0x2c3   : > { %v1715_v34 = vpop.f32.mrf.mxu2  ;;  %v1828_v18 = vpop.f32.mrf.mxu3  ;;  %2287 = vmatpush.msra.mxu1 %v2212_v12 }
 0x2c4   : > { %v1716_v31 = vadd.f32 %v1715_v34, %v3402_v39  ;;  %v1829_v17 = vadd.f32 %v1828_v18, %v4505_v61  ;;  %v1492_v38 = vpop.f32.mrf.mxu0  ;;  %v1605_v14 = vpop.f32.mrf.mxu1 }
 0x2c5   : > { %v1493_v52 = vadd.f32 %v1492_v38, %v3655_v35  ;;  %v1606_v54 = vadd.f32 %v1605_v14, %v3658_v5 }
 0x2c6   : > { %v1937_v11 = vmax.f32 %v1716_v31, 0.0  ;;  %v1938_v53 = vmax.f32 %v1829_v17, 0.0 }
 0x2c7   : > { %v1939_v43 = vmax.f32 %v1493_v52, 0.0  ;;  %v1940_v55 = vmax.f32 %v1606_v54, 0.0  ;;  %2666 = vmatmul.msk.f32.gmra.mxu0 %vm399_vm1, %v1324_v19  ;;  %2699 = vmatmul.msk.f32.gmra.mxu1 %vm399_vm1, %v1324_v19 }
 0x2c8   : > { %v2103_v37 = vadd.f32 %v2102_v47, %v1937_v11  ;;  %v2140_v44 = vadd.f32 %v2139_v24, %v1938_v53  ;;  %2732 = vmatmul.msk.f32.gmra.mxu2 %vm399_vm1, %v1324_v19  ;;  %2765 = vmatmul.msk.f32.gmra.mxu3 %vm399_vm1, %v1324_v19 }
 0x2c9   : > { %v2030_v10 = vadd.f32 %v2029_v0, %v1939_v43  ;;  %v2067_v8 = vadd.f32 %v2066_v20, %v1940_v55  ;;  %v1327_v0 = vpop.trf.xlu1  ;;  %v2243_v43 = vld [vmem:[%s4006_s27 + $0x1c0] sm:$0xff] }
 0x2ca   : > { %2328 = vmatpush.msra.mxu3 %v2243_v43 }
 0x2cb   : > { %v1718_v42 = vpop.f32.mrf.mxu2  ;;  %v1831_v50 = vpop.f32.mrf.mxu3 }
 0x2cc   : > { %v1719_v45 = vadd.f32 %v1718_v42, %v3402_v39  ;;  %v1832_v57 = vadd.f32 %v1831_v50, %v4505_v61  ;;  %v1495_v48 = vpop.f32.mrf.mxu0  ;;  %v1608_v28 = vpop.f32.mrf.mxu1 }
 0x2cd   : > { %v1496_v30 = vadd.f32 %v1495_v48, %v3655_v35  ;;  %v1609_v63 = vadd.f32 %v1608_v28, %v3658_v5 }
 0x2ce   : > { %v1941_v22 = vmax.f32 %v1719_v45, 0.0  ;;  %v1942_v23 = vmax.f32 %v1832_v57, 0.0 }
 0x2cf   : > { %v1943_v21 = vmax.f32 %v1496_v30, 0.0  ;;  %v1944_v33 = vmax.f32 %v1609_v63, 0.0  ;;  %2667 = vmatmul.msk.f32.gmra.mxu0 %vm399_vm1, %v1325_v27  ;;  %2700 = vmatmul.msk.f32.gmra.mxu1 %vm399_vm1, %v1325_v27 }
 0x2d0   : > { %v2104_v59 = vadd.f32 %v2103_v37, %v1941_v22  ;;  %v2141_v16 = vadd.f32 %v2140_v44, %v1942_v23  ;;  %2733 = vmatmul.msk.f32.gmra.mxu2 %vm399_vm1, %v1325_v27  ;;  %2766 = vmatmul.msk.f32.gmra.mxu3 %vm399_vm1, %v1325_v27  ;;  %v2195_v44 = vld [vmem:[%s4006_s27 + $0x40] sm:$0xff] }
 0x2d1   : > { %v2031_v7 = vadd.f32 %v2030_v10, %v1943_v21  ;;  %v2068_v62 = vadd.f32 %v2067_v8, %v1944_v33  ;;  %v2211_v10 = vld [vmem:[%s4006_s27 + $0xc0] sm:$0xff]  ;;  %2268 = vmatpush.msra.mxu0 %v2195_v44 }
 0x2d2   : > { %2288 = vmatpush.msra.mxu1 %v2211_v10 }
 0x2d3   : > { %v1721_v58 = vpop.f32.mrf.mxu2  ;;  %v1834_v19 = vpop.f32.mrf.mxu3 }
 0x2d4   : > { %v1722_v56 = vadd.f32 %v1721_v58, %v3402_v39  ;;  %v1835_v25 = vadd.f32 %v1834_v19, %v4505_v61  ;;  %v1498_v60 = vpop.f32.mrf.mxu0  ;;  %v1611_v9 = vpop.f32.mrf.mxu1 }
 0x2d5   : > { %v1499_v29 = vadd.f32 %v1498_v60, %v3655_v35  ;;  %v1612_v2 = vadd.f32 %v1611_v9, %v3658_v5 }
 0x2d6   : > { %v1945_v1 = vmax.f32 %v1722_v56, 0.0  ;;  %v1946_v51 = vmax.f32 %v1835_v25, 0.0 }
 0x2d7   : > { %v1947_v15 = vmax.f32 %v1499_v29, 0.0  ;;  %v1948_v13 = vmax.f32 %v1612_v2, 0.0  ;;  %2668 = vmatmul.msk.f32.gmra.mxu0 %vm399_vm1, %v1326_v40  ;;  %2701 = vmatmul.msk.f32.gmra.mxu1 %vm399_vm1, %v1326_v40 }
 0x2d8   : > { %v2105_v4 = vadd.f32 %v2104_v59, %v1945_v1  ;;  %v2142_v32 = vadd.f32 %v2141_v16, %v1946_v51  ;;  %2734 = vmatmul.msk.f32.gmra.mxu2 %vm399_vm1, %v1326_v40  ;;  %2767 = vmatmul.msk.f32.gmra.mxu3 %vm399_vm1, %v1326_v40  ;;  %v2226_v40 = vld [vmem:[%s4006_s27 + $0x138] sm:$0xff] }
 0x2d9   : > { %v2032_v47 = vadd.f32 %v2031_v7, %v1947_v15  ;;  %v2069_v24 = vadd.f32 %v2068_v62, %v1948_v13  ;;  %2309 = vmatpush.msra.mxu2 %v2226_v40  ;;  %v2242_v51 = vld [vmem:[%s4006_s27 + $0x1b8] sm:$0xff] }
 0x2da   : > { %2329 = vmatpush.msra.mxu3 %v2242_v51 }
 0x2db   : > { %v1724_v20 = vpop.f32.mrf.mxu2  ;;  %v1837_v41 = vpop.f32.mrf.mxu3 }
 0x2dc   : > { %v1725_v6 = vadd.f32 %v1724_v20, %v3402_v39  ;;  %v1838_v34 = vadd.f32 %v1837_v41, %v4505_v61  ;;  %v1501_v18 = vpop.f32.mrf.mxu0  ;;  %v1614_v31 = vpop.f32.mrf.mxu1 }
 0x2dd   : > { %v1502_v17 = vadd.f32 %v1501_v18, %v3655_v35  ;;  %v1615_v38 = vadd.f32 %v1614_v31, %v3658_v5 }
 0x2de   : > { %v1949_v14 = vmax.f32 %v1725_v6, 0.0  ;;  %v1950_v52 = vmax.f32 %v1838_v34, 0.0 }
 0x2df   : > { %v1951_v54 = vmax.f32 %v1502_v17, 0.0  ;;  %v1952_v11 = vmax.f32 %v1615_v38, 0.0  ;;  %2669 = vmatmul.msk.f32.gmra.mxu0 %vm399_vm1, %v1327_v0  ;;  %2702 = vmatmul.msk.f32.gmra.mxu1 %vm399_vm1, %v1327_v0 }
 0x2e0   : > { %v2106_v53 = vadd.f32 %v2105_v4, %v1949_v14  ;;  %v2143_v27 = vadd.f32 %v2142_v32, %v1950_v52  ;;  %2735 = vmatmul.msk.f32.gmra.mxu2 %vm399_vm1, %v1327_v0  ;;  %2768 = vmatmul.msk.f32.gmra.mxu3 %vm399_vm1, %v1327_v0  ;;  %v2194_v4 = vld [vmem:[%s4006_s27 + $0x38] sm:$0xff] }
 0x2e1   : > { %v2033_v55 = vadd.f32 %v2032_v47, %v1951_v54  ;;  %v2070_v37 = vadd.f32 %v2069_v24, %v1952_v11  ;;  %v2210_v32 = vld [vmem:[%s4006_s27 + $0xb8] sm:$0xff]  ;;  %2269 = vmatpush.msra.mxu0 %v2194_v4 }
 0x2e2   : > { %2289 = vmatpush.msra.mxu1 %v2210_v32 }
 0x2e3   : > { %v1727_v8 = vpop.f32.mrf.mxu2  ;;  %v1840_v26 = vpop.f32.mrf.mxu3 }
 0x2e4   : > { %v1728_v42 = vadd.f32 %v1727_v8, %v3402_v39  ;;  %v1841_v50 = vadd.f32 %v1840_v26, %v4505_v61  ;;  %v1504_v45 = vpop.f32.mrf.mxu0  ;;  %v1617_v57 = vpop.f32.mrf.mxu1 }
 0x2e5   : > { %v1505_v48 = vadd.f32 %v1504_v45, %v3655_v35  ;;  %v1618_v28 = vadd.f32 %v1617_v57, %v3658_v5 }
 0x2e6   : > { %v1953_v30 = vmax.f32 %v1728_v42, 0.0  ;;  %v1954_v63 = vmax.f32 %v1841_v50, 0.0 }
 0x2e7   : > { %v1955_v22 = vmax.f32 %v1505_v48, 0.0  ;;  %v1956_v23 = vmax.f32 %v1618_v28, 0.0 }
 0x2e8   : > { %v2107_v21 = vadd.f32 %v2106_v53, %v1953_v30  ;;  %v2144_v33 = vadd.f32 %v2143_v27, %v1954_v63  ;;  %v2225_v53 = vld [vmem:[%s4006_s27 + $0x130] sm:$0xff] }
 0x2e9   : > { %v2034_v59 = vadd.f32 %v2033_v55, %v1955_v22  ;;  %v2071_v16 = vadd.f32 %v2070_v37, %v1956_v23  ;;  %2310 = vmatpush.msra.mxu2 %v2225_v53  ;;  %v2241_v30 = vld [vmem:[%s4006_s27 + $0x1b0] sm:$0xff]  ;;  %v2239_v53 = vld [vmem:[%s4006_s27 + $0x1a0] sm:$0xff] }
 0x2ea   : > { %2330 = vmatpush.msra.mxu3 %v2241_v30  ;;  %v2193_v23 = vld [vmem:[%s4006_s27 + $0x30] sm:$0xff] }
 0x2eb   : > { %v1730_v49 = vpop.f32.mrf.mxu2  ;;  %v1843_v7 = vpop.f32.mrf.mxu3  ;;  %2270 = vmatpush.msra.mxu0 %v2193_v23 }
 0x2ec   : > { %v1731_v62 = vadd.f32 %v1730_v49, %v3402_v39  ;;  %v1844_v36 = vadd.f32 %v1843_v7, %v4505_v61  ;;  %v1507_v12 = vpop.f32.mrf.mxu0  ;;  %v1620_v58 = vpop.f32.mrf.mxu1 }
 0x2ed   : > { %v1508_v19 = vadd.f32 %v1507_v12, %v3655_v35  ;;  %v1621_v56 = vadd.f32 %v1620_v58, %v3658_v5 }
 0x2ee   : > { %v1957_v25 = vmax.f32 %v1731_v62, 0.0  ;;  %v1958_v60 = vmax.f32 %v1844_v36, 0.0 }
 0x2ef   : > { %v1959_v9 = vmax.f32 %v1508_v19, 0.0  ;;  %v1960_v29 = vmax.f32 %v1621_v56, 0.0 }
 0x2f0   : > { %v2108_v2 = vadd.f32 %v2107_v21, %v1957_v25  ;;  %v2145_v1 = vadd.f32 %v2144_v33, %v1958_v60  ;;  %v2209_v21 = vld [vmem:[%s4006_s27 + $0xb0] sm:$0xff] }
 0x2f1   : > { %v2035_v15 = vadd.f32 %v2034_v59, %v1959_v9  ;;  %v2072_v13 = vadd.f32 %v2071_v16, %v1960_v29  ;;  %2290 = vmatpush.msra.mxu1 %v2209_v21  ;;  %v2221_v21 = vld [vmem:[%s4006_s27 + $0x110] sm:$0xff] }
 0x2f3   : > { %v1733_v47 = vpop.f32.mrf.mxu2  ;;  %v1846_v24 = vpop.f32.mrf.mxu3 }
 0x2f4   : > { %v1734_v46 = vadd.f32 %v1733_v47, %v3402_v39  ;;  %v1847_v0 = vadd.f32 %v1846_v24, %v4505_v61  ;;  %v1510_v20 = vpop.f32.mrf.mxu0  ;;  %v1623_v41 = vpop.f32.mrf.mxu1 }
 0x2f5   : > { %v1511_v6 = vadd.f32 %v1510_v20, %v3655_v35  ;;  %v1624_v34 = vadd.f32 %v1623_v41, %v3658_v5  ;;  %v2240_v20 = vld [vmem:[%s4006_s27 + $0x1a8] sm:$0xff] }
 0x2f6   : > { %v1961_v18 = vmax.f32 %v1734_v46, 0.0  ;;  %v1962_v31 = vmax.f32 %v1847_v0, 0.0  ;;  %2331 = vmatpush.msra.mxu3 %v2240_v20  ;;  %v2192_v41 = vld [vmem:[%s4006_s27 + $0x28] sm:$0xff] }
 0x2f7   : > { %v1963_v17 = vmax.f32 %v1511_v6, 0.0  ;;  %v1964_v38 = vmax.f32 %v1624_v34, 0.0  ;;  %v2208_v6 = vld [vmem:[%s4006_s27 + $0xa8] sm:$0xff]  ;;  %2271 = vmatpush.msra.mxu0 %v2192_v41 }
 0x2f8   : > { %v2109_v14 = vadd.f32 %v2108_v2, %v1961_v18  ;;  %v2146_v52 = vadd.f32 %v2145_v1, %v1962_v31  ;;  %v2224_v2 = vld [vmem:[%s4006_s27 + $0x128] sm:$0xff]  ;;  %2291 = vmatpush.msra.mxu1 %v2208_v6  ;;  %2332 = vmatpush.msra.mxu3 %v2239_v53 }
 0x2f9   : > { %v2036_v54 = vadd.f32 %v2035_v15, %v1963_v17  ;;  %v2073_v11 = vadd.f32 %v2072_v13, %v1964_v38  ;;  %2311 = vmatpush.msra.mxu2 %v2224_v2  ;;  %v2223_v38 = vld [vmem:[%s4006_s27 + $0x120] sm:$0xff] }
 0x2fb   : > { %v1736_v27 = vpop.f32.mrf.mxu2  ;;  %v1849_v43 = vpop.f32.mrf.mxu3  ;;  %2312 = vmatpush.msra.mxu2 %v2223_v38 }
 0x2fc   : > { %v1737_v55 = vadd.f32 %v1736_v27, %v3402_v39  ;;  %v1850_v37 = vadd.f32 %v1849_v43, %v4505_v61  ;;  %v1513_v44 = vpop.f32.mrf.mxu0  ;;  %v1626_v10 = vpop.f32.mrf.mxu1  ;;  %v2191_v27 = vld [vmem:[%s4006_s27 + $0x20] sm:$0xff] }
 0x2fd   : > { %v1514_v8 = vadd.f32 %v1513_v44, %v3655_v35  ;;  %v1627_v26 = vadd.f32 %v1626_v10, %v3658_v5  ;;  %v2207_v43 = vld [vmem:[%s4006_s27 + $0xa0] sm:$0xff]  ;;  %2272 = vmatpush.msra.mxu0 %v2191_v27 }
 0x2fe   : > { %v1965_v42 = vmax.f32 %v1737_v55, 0.0  ;;  %v1966_v50 = vmax.f32 %v1850_v37, 0.0  ;;  %2292 = vmatpush.msra.mxu1 %v2207_v43 }
 0x2ff   : > { %v1967_v45 = vmax.f32 %v1514_v8, 0.0  ;;  %v1968_v57 = vmax.f32 %v1627_v26, 0.0  ;;  %v2222_v8 = vld [vmem:[%s4006_s27 + $0x118] sm:$0xff] }
 0x300   : > { %v2110_v48 = vadd.f32 %v2109_v14, %v1965_v42  ;;  %v2147_v28 = vadd.f32 %v2146_v52, %v1966_v50  ;;  %2313 = vmatpush.msra.mxu2 %v2222_v8 }
 0x301   : > { %v2037_v63 = vadd.f32 %v2036_v54, %v1967_v45  ;;  %v2074_v22 = vadd.f32 %v2073_v11, %v1968_v57  ;;  %v2238_v57 = vld [vmem:[%s4006_s27 + $0x198] sm:$0xff] }
 0x302   : > { %2333 = vmatpush.msra.mxu3 %v2238_v57  ;;  %2314 = vmatpush.msra.mxu2 %v2221_v21 }
 0x303   : > { %v1739_v33 = vpop.f32.mrf.mxu2  ;;  %v1852_v59 = vpop.f32.mrf.mxu3 }
 0x304   : > { %v1740_v16 = vadd.f32 %v1739_v33, %v3402_v39  ;;  %v1853_v40 = vadd.f32 %v1852_v59, %v4505_v61  ;;  %v1516_v49 = vpop.f32.mrf.mxu0  ;;  %v1629_v7 = vpop.f32.mrf.mxu1 }
 0x305   : > { %v1517_v62 = vadd.f32 %v1516_v49, %v3655_v35  ;;  %v1630_v36 = vadd.f32 %v1629_v7, %v3658_v5 }
 0x306   : > { %v1969_v12 = vmax.f32 %v1740_v16, 0.0  ;;  %v1970_v58 = vmax.f32 %v1853_v40, 0.0 }
 0x307   : > { %v1971_v19 = vmax.f32 %v1517_v62, 0.0  ;;  %v1972_v56 = vmax.f32 %v1630_v36, 0.0  ;;  %v2237_v36 = vld [vmem:[%s4006_s27 + $0x190] sm:$0xff] }
 0x308   : > { %v2111_v25 = vadd.f32 %v2110_v48, %v1969_v12  ;;  %v2148_v60 = vadd.f32 %v2147_v28, %v1970_v58  ;;  %v2190_v48 = vld [vmem:[%s4006_s27 + $0x18] sm:$0xff]  ;;  %2334 = vmatpush.msra.mxu3 %v2237_v36 }
 0x309   : > { %v4307_v9 = vadd.f32 %v2037_v63, %v1971_v19  ;;  %v4309_v29 = vadd.f32 %v2074_v22, %v1972_v56  ;;  %v2206_v28 = vld [vmem:[%s4006_s27 + $0x98] sm:$0xff]  ;;  %2273 = vmatpush.msra.mxu0 %v2190_v48 }
 0x30a   : > { %2293 = vmatpush.msra.mxu1 %v2206_v28 }
 0x30b   : > { %v1742_v1 = vpop.f32.mrf.mxu2  ;;  %v1855_v51 = vpop.f32.mrf.mxu3 }
 0x30c   : > { %v1743_v15 = vadd.f32 %v1742_v1, %v3402_v39  ;;  %v1856_v13 = vadd.f32 %v1855_v51, %v4505_v61  ;;  %v1519_v4 = vpop.f32.mrf.mxu0  ;;  %v1632_v32 = vpop.f32.mrf.mxu1 }
 0x30d   : > { %v1520_v49 = vadd.f32 %v1519_v4, %v3655_v35  ;;  %v1633_v7 = vadd.f32 %v1632_v32, %v3658_v5 }
 0x30e   : > { %v1973_v47 = vmax.f32 %v1743_v15, 0.0  ;;  %v1974_v24 = vmax.f32 %v1856_v13, 0.0 }
 0x30f   : > { %v1975_v19 = vmax.f32 %v1520_v49, 0.0 }
 0x310   : > { %v4314_v46 = vadd.f32 %v2111_v25, %v1973_v47  ;;  %v4316_v0 = vadd.f32 %v2148_v60, %v1974_v24  ;;  %v1976_v60 = vmax.f32 %v1633_v7, 0.0 }
 0x311   : > { %v2039_v41 = vadd.f32 %v4307_v9, %v1975_v19 }
 0x313   : > { %v1745_v34 = vpop.f32.mrf.mxu2  ;;  %v1858_v18 = vpop.f32.mrf.mxu3 }
 0x314   : > { %v1522_v31 = vpop.f32.mrf.mxu0  ;;  %v1635_v17 = vpop.f32.mrf.mxu1  ;;  %v1746_v62 = vadd.f32 %v1745_v34, %v3402_v39  ;;  %v1859_v12 = vadd.f32 %v1858_v18, %v4505_v61  ;;  %v2076_v18 = vadd.f32 %v4309_v29, %v1976_v60 }
 0x315   : > { %v1523_v58 = vadd.f32 %v1522_v31, %v3655_v35  ;;  %v1636_v1 = vadd.f32 %v1635_v17, %v3658_v5 }
 0x316   : > { %v1977_v2 = vmax.f32 %v1746_v62, 0.0  ;;  %v1978_v32 = vmax.f32 %v1859_v12, 0.0 }
 0x317   : > { %v1979_v47 = vmax.f32 %v1523_v58, 0.0  ;;  %v1980_v17 = vmax.f32 %v1636_v1, 0.0 }
 0x318   : > { %v2113_v31 = vadd.f32 %v4314_v46, %v1977_v2 }
 0x319   : > { %v2040_v9 = vadd.f32 %v2039_v41, %v1979_v47  ;;  %v2077_v57 = vadd.f32 %v2076_v18, %v1980_v17 }
 0x31b   : > { %v1748_v14 = vpop.f32.mrf.mxu2  ;;  %v1861_v52 = vpop.f32.mrf.mxu3 }
 0x31c   : > { %v1525_v54 = vpop.f32.mrf.mxu0  ;;  %v1638_v11 = vpop.f32.mrf.mxu1  ;;  %v1749_v13 = vadd.f32 %v1748_v14, %v3402_v39  ;;  %v1862_v4 = vadd.f32 %v1861_v52, %v4505_v61 }
 0x31d   : > { %v1526_v24 = vadd.f32 %v1525_v54, %v3655_v35  ;;  %v1639_v20 = vadd.f32 %v1638_v11, %v3658_v5  ;;  %v2150_v11 = vadd.f32 %v4316_v0, %v1978_v32 }
 0x31e   : > { %v1981_v14 = vmax.f32 %v1749_v13, 0.0  ;;  %v1982_v52 = vmax.f32 %v1862_v4, 0.0 }
 0x31f   : > { %v1983_v27 = vmax.f32 %v1526_v24, 0.0  ;;  %v1984_v43 = vmax.f32 %v1639_v20, 0.0  ;;  %v2189_v24 = vld [vmem:[%s4006_s27 + $0x10] sm:$0xff] }
 0x320   : > { %v2114_v21 = vadd.f32 %v2113_v31, %v1981_v14  ;;  %v2151_v49 = vadd.f32 %v2150_v11, %v1982_v52  ;;  %2274 = vmatpush.msra.mxu0 %v2189_v24 }
 0x321   : > { %v2041_v36 = vadd.f32 %v2040_v9, %v1983_v27 }
 0x323   : > { %v1751_v55 = vpop.f32.mrf.mxu2  ;;  %v1864_v37 = vpop.f32.mrf.mxu3 }
 0x324   : > { %v1528_v44 = vpop.f32.mrf.mxu0  ;;  %v1641_v10 = vpop.f32.mrf.mxu1  ;;  %v1752_v6 = vadd.f32 %v1751_v55, %v3402_v39  ;;  %v1865_v34 = vadd.f32 %v1864_v37, %v4505_v61 }
 0x325   : > { %v1529_v38 = vadd.f32 %v1528_v44, %v3655_v35  ;;  %v1642_v53 = vadd.f32 %v1641_v10, %v3658_v5 }
 0x326   : > { %v1985_v55 = vmax.f32 %v1752_v6, 0.0  ;;  %v1986_v37 = vmax.f32 %v1865_v34, 0.0 }
 0x327   : > { %v1987_v48 = vmax.f32 %v1529_v38, 0.0  ;;  %v1988_v7 = vmax.f32 %v1642_v53, 0.0 }
 0x328   : > { %v2115_v58 = vadd.f32 %v2114_v21, %v1985_v55  ;;  %v2152_v19 = vadd.f32 %v2151_v49, %v1986_v37 }
 0x329   : > { %v2042_v2 = vadd.f32 %v2041_v36, %v1987_v48 }
 0x32b   : > { %v1754_v26 = vpop.f32.mrf.mxu2  ;;  %v1867_v42 = vpop.f32.mrf.mxu3 }
 0x32c   : > { %v1531_v50 = vpop.f32.mrf.mxu0  ;;  %v1644_v45 = vpop.f32.mrf.mxu1  ;;  %v1755_v54 = vadd.f32 %v1754_v26, %v3402_v39  ;;  %v1868_v29 = vadd.f32 %v1867_v42, %v4505_v61  ;;  %v2078_v42 = vadd.f32 %v2077_v57, %v1984_v43 }
 0x32d   : > { %v1532_v46 = vadd.f32 %v1531_v50, %v3655_v35  ;;  %v1645_v10 = vadd.f32 %v1644_v45, %v3658_v5 }
 0x32e   : > { %v1989_v62 = vmax.f32 %v1755_v54, 0.0  ;;  %v1990_v60 = vmax.f32 %v1868_v29, 0.0  ;;  %v2079_v4 = vadd.f32 %v2078_v42, %v1988_v7 }
 0x32f   : > { %v1991_v45 = vmax.f32 %v1532_v46, 0.0 }
 0x330   : > { %v2116_v32 = vadd.f32 %v2115_v58, %v1989_v62 }
 0x331   : > { %v2043_v18 = vadd.f32 %v2042_v2, %v1991_v45 }
 0x333   : > { %v1757_v30 = vpop.f32.mrf.mxu2  ;;  %v4329_v63 = vpop.f32.mrf.mxu3 }
 0x334   : > { %v1534_v22 = vpop.f32.mrf.mxu0  ;;  %v1647_v23 = vpop.f32.mrf.mxu1  ;;  %v1758_v26 = vadd.f32 %v1757_v30, %v3402_v39  ;;  %v1992_v30 = vmax.f32 %v1645_v10, 0.0  ;;  %v1871_v13 = vadd.f32 %v4329_v63, %v4505_v61  ;;  %v2153_v63 = vadd.f32 %v2152_v19, %v1990_v60 }
 0x335   : > { %v1535_v50 = vadd.f32 %v1534_v22, %v3655_v35  ;;  %v1648_v12 = vadd.f32 %v1647_v23, %v3658_v5  ;;  %v2205_v23 = vld [vmem:[%s4006_s27 + $0x90] sm:$0xff] }
 0x336   : > { %v1993_v1 = vmax.f32 %v1758_v26, 0.0  ;;  %2294 = vmatpush.msra.mxu1 %v2205_v23  ;;  %v2080_v38 = vadd.f32 %v2079_v4, %v1992_v30  ;;  %v1994_v52 = vmax.f32 %v1871_v13, 0.0 }
 0x337   : > { %v1995_v20 = vmax.f32 %v1535_v50, 0.0  ;;  %v1996_v41 = vmax.f32 %v1648_v12, 0.0 }
 0x338   : > { %v2117_v14 = vadd.f32 %v2116_v32, %v1993_v1  ;;  %v2154_v48 = vadd.f32 %v2153_v63, %v1994_v52  ;;  %v2236_v52 = vld [vmem:[%s4006_s27 + $0x188] sm:$0xff] }
 0x339   : > { %v2081_v43 = vadd.f32 %v2080_v38, %v1996_v41  ;;  %2335 = vmatpush.msra.mxu3 %v2236_v52 }
 0x33b   : > { %v4332_v33 = vpop.f32.mrf.mxu2  ;;  %v4334_v59 = vpop.f32.mrf.mxu3 }
 0x33c   : > { %v4336_v16 = vpop.f32.mrf.mxu0  ;;  %v4338_v40 = vpop.f32.mrf.mxu1  ;;  %v1761_v6 = vadd.f32 %v4332_v33, %v3402_v39  ;;  %v1874_v34 = vadd.f32 %v4334_v59, %v4505_v61 }
 0x33d   : > { %v1538_v47 = vadd.f32 %v4336_v16, %v3655_v35  ;;  %v1651_v22 = vadd.f32 %v4338_v40, %v3658_v5 }
 0x33e   : > { %v1997_v55 = vmax.f32 %v1761_v6, 0.0 }
 0x33f   : > { %v1999_v54 = vmax.f32 %v1538_v47, 0.0  ;;  %v2000_v11 = vmax.f32 %v1651_v22, 0.0 }
 0x340   : > { %v2118_v7 = vadd.f32 %v2117_v14, %v1997_v55  ;;  %v2220_v14 = vld [vmem:[%s4006_s27 + $0x108] sm:$0xff] }
 0x341   : > { %2315 = vmatpush.msra.mxu2 %v2220_v14 }
 0x343   : > { %v4346_v56 = vpop.f32.mrf.mxu2  ;;  %v4348_v25 = vpop.f32.mrf.mxu3 }
 0x344   : > { %v4351_v51 = vpop.f32.mrf.mxu0  ;;  %v4353_v15 = vpop.f32.mrf.mxu1  ;;  %v1764_v33 = vadd.f32 %v4346_v56, %v3402_v39  ;;  %v1877_v10 = vadd.f32 %v4348_v25, %v4505_v61 }
 0x345   : > { %v1541_v16 = vadd.f32 %v4351_v51, %v3655_v35  ;;  %v1654_v40 = vadd.f32 %v4353_v15, %v3658_v5  ;;  %v2044_v51 = vadd.f32 %v2043_v18, %v1995_v20  ;;  %v1998_v15 = vmax.f32 %v1874_v34, 0.0 }
 0x346   : > { %v2001_v56 = vmax.f32 %v1764_v33, 0.0  ;;  %v2002_v2 = vmax.f32 %v1877_v10, 0.0  ;;  %v2188_v33 = vld [vmem:[%s4006_s27 + $0x8] sm:$0xff] }
 0x347   : > { %v2003_v37 = vmax.f32 %v1541_v16, 0.0  ;;  %v2004_v29 = vmax.f32 %v1654_v40, 0.0  ;;  %v2155_v62 = vadd.f32 %v2154_v48, %v1998_v15  ;;  %2275 = vmatpush.msra.mxu0 %v2188_v33 }
 0x348   : > { %v2119_v45 = vadd.f32 %v2118_v7, %v2001_v56 }
 0x349   : > { %v2156_v18 = vadd.f32 %v2155_v62, %v2002_v2 }
 0x34b   : > { %v4370_v8 = vpop.f32.mrf.mxu2  ;;  %v4372_v44 = vpop.f32.mrf.mxu3 }
 0x34c   : > { %v1543_v0 = vpop.f32.mrf.mxu0  ;;  %v1656_v28 = vpop.f32.mrf.mxu1  ;;  %v1767_v26 = vadd.f32 %v4370_v8, %v3402_v39  ;;  %v1880_v36 = vadd.f32 %v4372_v44, %v4505_v61 }
 0x34d   : > { %v1544_v9 = vadd.f32 %v1543_v0, %v3655_v35  ;;  %v1657_v27 = vadd.f32 %v1656_v28, %v3658_v5  ;;  %v2045_v0 = vadd.f32 %v2044_v51, %v1999_v54  ;;  %v2082_v28 = vadd.f32 %v2081_v43, %v2000_v11  ;;  %v2219_v51 = vld [vmem:[%s4006_s27 + $0x100] sm:$0xff] }
 0x34e   : > { %v2005_v8 = vmax.f32 %v1767_v26, 0.0  ;;  %v2006_v22 = vmax.f32 %v1880_v36, 0.0  ;;  %v2235_v43 = vld [vmem:[%s4006_s27 + $0x180] sm:$0xff]  ;;  %2316 = vmatpush.msra.mxu2 %v2219_v51 }
 0x34f   : > { %v2007_v21 = vmax.f32 %v1544_v9, 0.0  ;;  %v2008_v49 = vmax.f32 %v1657_v27, 0.0  ;;  %v2046_v50 = vadd.f32 %v2045_v0, %v2003_v37  ;;  %v2083_v12 = vadd.f32 %v2082_v28, %v2004_v29  ;;  %v2204_v27 = vld [vmem:[%s4006_s27 + $0x88] sm:$0xff]  ;;  %v2187_v29 = vld [vmem:[%s4006_s27] sm:$0xff]  ;;  %2336 = vmatpush.msra.mxu3 %v2235_v43 }
 0x350   : > { %v2120_v40 = vadd.f32 %v2119_v45, %v2005_v8  ;;  %2295 = vmatpush.msra.mxu1 %v2204_v27  ;;  %2276 = vmatpush.msra.mxu0 %v2187_v29 }
 0x351   : > { %v2047_v4 = vadd.f32 %v2046_v50, %v2007_v21  ;;  %v2084_v32 = vadd.f32 %v2083_v12, %v2008_v49 }
 0x353   : > { %v1769_v31 = vpop.f32.mrf.mxu2  ;;  %v1882_v17 = vpop.f32.mrf.mxu3 }
 0x354   : > { %v1546_v53 = vpop.f32.mrf.mxu0  ;;  %v1659_v59 = vpop.f32.mrf.mxu1  ;;  %v1770_v42 = vadd.f32 %v1769_v31, %v3402_v39  ;;  %v1883_v30 = vadd.f32 %v1882_v17, %v4505_v61  ;;  %v2157_v31 = vadd.f32 %v2156_v18, %v2006_v22 }
 0x355   : > { %v1547_v46 = vadd.f32 %v1546_v53, %v3655_v35  ;;  %v1660_v57 = vadd.f32 %v1659_v59, %v3658_v5 }
 0x356   : > { %v2009_v24 = vmax.f32 %v1770_v42, 0.0  ;;  %v2010_v16 = vmax.f32 %v1883_v30, 0.0 }
 0x357   : > { %v2011_v58 = vmax.f32 %v1547_v46, 0.0  ;;  %v2012_v19 = vmax.f32 %v1660_v57, 0.0  ;;  %v2203_v46 = vld [vmem:[%s4006_s27 + $0x80] sm:$0xff] }
 0x358   : > { %v2121_v53 = vadd.f32 %v2120_v40, %v2009_v24  ;;  %v2158_v55 = vadd.f32 %v2157_v31, %v2010_v16  ;;  %2296 = vmatpush.msra.mxu1 %v2203_v46  ;;  %v2184_v31 = vld [vmem:[#allocation3] sm:$0x3] }
 0x359   : > { %v2048_v41 = vadd.f32 %v2047_v4, %v2011_v58  ;;  %v2085_v6 = vadd.f32 %v2084_v32, %v2012_v19 }
 0x35b   : > { %v1772_v60 = vpop.f32.mrf.mxu2  ;;  %v1885_v25 = vpop.f32.mrf.mxu3 }
 0x35c   : > { %v1549_v1 = vpop.f32.mrf.mxu0  ;;  %v1662_v13 = vpop.f32.mrf.mxu1  ;;  %v1773_v23 = vadd.f32 %v1772_v60, %v3402_v39  ;;  %v1886_v20 = vadd.f32 %v1885_v25, %v4505_v61 }
 0x35d   : > { %v1550_v47 = vadd.f32 %v1549_v1, %v3655_v35  ;;  %v1663_v44 = vadd.f32 %v1662_v13, %v3658_v5 }
 0x35e   : > { %v2013_v17 = vmax.f32 %v1773_v23, 0.0  ;;  %v2014_v38 = vmax.f32 %v1886_v20, 0.0 }
 0x35f   : > { %v2015_v34 = vmax.f32 %v1550_v47, 0.0  ;;  %v2016_v63 = vmax.f32 %v1663_v44, 0.0 }
 0x360   : > { %v2122_v56 = vadd.f32 %v2121_v53, %v2013_v17  ;;  %v2159_v10 = vadd.f32 %v2158_v55, %v2014_v38 }
 0x361   : > { %v2049_v35 = vadd.f32 %v2048_v41, %v2015_v34  ;;  %v2086_v5 = vadd.f32 %v2085_v6, %v2016_v63 }
 0x363   : > { %v2050_v59 = vrot.slane %v2049_v35, 4  ;;  %v2087_v54 = vrot.slane %v2086_v5, 4  ;;  %v1775_v11 = vpop.f32.mrf.mxu2  ;;  %v1888_v9 = vpop.f32.mrf.mxu3 }
 0x364   : > { %v1776_v15 = vadd.f32 %v1775_v11, %v3402_v39  ;;  %v1889_v37 = vadd.f32 %v1888_v9, %v4505_v61 }
 0x365   : > { %v2051_v57 = vadd.f32 %v2050_v59, %v2049_v35  ;;  %v2088_v48 = vadd.f32 %v2087_v54, %v2086_v5 }
 0x366   : > { %v2017_v26 = vmax.f32 %v1776_v15, 0.0  ;;  %v2018_v0 = vmax.f32 %v1889_v37, 0.0 }
 0x367   : > { %v2052_v28 = vrot.slane %v2051_v57, 2  ;;  %v2089_v21 = vrot.slane %v2088_v48, 2 }
 0x368   : > { %v2123_v49 = vadd.f32 %v2122_v56, %v2017_v26  ;;  %v2160_v39 = vadd.f32 %v2159_v10, %v2018_v0 }
 0x369   : > { %v2053_v7 = vadd.f32 %v2052_v28, %v2051_v57  ;;  %v2090_v61 = vadd.f32 %v2089_v21, %v2088_v48 }
 0x36a   : > { %v2124_v62 = vrot.slane %v2123_v49, 4  ;;  %v2161_v36 = vrot.slane %v2160_v39, 4 }
 0x36b   : > { %v2054_v42 = vrot.slane %v2053_v7, 1  ;;  %v2091_v50 = vrot.slane %v2090_v61, 1 }
 0x36c   : > { %v2125_v12 = vadd.f32 %v2124_v62, %v2123_v49  ;;  %v2162_v58 = vadd.f32 %v2161_v36, %v2160_v39 }
 0x36d   : > { %v2092_v19 = vadd.f32 %v2091_v50, %v2090_v61  ;;  %v2055_v45 = vadd.f32 %v2054_v42, %v2053_v7 }
 0x36e   : > { %v2126_v60 = vrot.slane %v2125_v12, 2  ;;  %v2163_v25 = vrot.slane %v2162_v58, 2 }
 0x36f   : > { %v2175_v2 = vrot.slane %v2092_v19, 7 }
 0x370   : > { %v2127_v8 = vadd.f32 %v2126_v60, %v2125_v12  ;;  %v2164_v30 = vadd.f32 %v2163_v25, %v2162_v58 }
 0x371   : > { %v2178_v1 = vsel %vm1244_vm2, %v2055_v45, %v2175_v2 }
 0x372   : > { %v2128_v13 = vrot.slane %v2127_v8, 1  ;;  %v2165_v4 = vrot.slane %v2164_v30, 1 }
 0x374   : > { %v2129_v32 = vadd.f32 %v2128_v13, %v2127_v8  ;;  %v2166_v47 = vadd.f32 %v2165_v4, %v2164_v30 }
 0x376   : > { %v2176_v44 = vrot.slane %v2129_v32, 6  ;;  %v2177_v22 = vrot.slane %v2166_v47, 5 }
 0x378   : > { %v2179_v24 = vsel %vm1246_vm3, %v2176_v44, %v2177_v22 }
 0x379   : > { %v2180_v23 = vsel %vm1248_vm4, %v2178_v1, %v2179_v24 }
 0x37a   : > { %2183 = vst.msk [vmem:[#allocation2 + $0x1] ss:$2 sm:$0xf] %vm4039_vm5, %v2180_v23 }
 0x381   : > { %v2185_v20 = vld [vmem:[#allocation2] sm:$0xff] }
 0x382   : > { %2252 = vst [vmem:[#allocation1] ss:$4 sm:$0xff] %v2185_v20 }
 0x389   : > { %v2253_v41 = vld.sshfl [vmem:[#allocation1] sm:$0xff pattern:$0x73625140]  ;;  %v2254_v6 = vld.sshfl [vmem:[#allocation1 + $0x8] sm:$0xff pattern:$0x73625140] }
 0x38a   : > { %2277 = vmatmul.f32.vlgmr.msra.gmra.mxu0 %v2253_v41  ;;  %2297 = vmatmul.f32.vlgmr.msra.gmra.mxu1 %v2254_v6  ;;  %v2255_v34 = vld.sshfl [vmem:[#allocation1 + $0x10] sm:$0xff pattern:$0x73625140]  ;;  %v2256_v63 = vld.sshfl [vmem:[#allocation1 + $0x18] sm:$0xff pattern:$0x73625140] }
 0x38b   : > { %2317 = vmatmul.f32.vlgmr.msra.gmra.mxu2 %v2255_v34  ;;  %2337 = vmatmul.f32.vlgmr.msra.gmra.mxu3 %v2256_v63 }
 0x407   : > { %v2278_v18 = vpop.f32.mrf.mxu0  ;;  %v2298_v16 = vpop.f32.mrf.mxu1 }
 0x408   : > { %v2299_v40 = vadd.f32 %v2298_v16, %v2278_v18 }
 0x40e   : > { %v2318_v35 = vpop.f32.mrf.mxu2  ;;  %v2338_v17 = vpop.f32.mrf.mxu3 }
 0x40f   : > { %v2319_v5 = vadd.f32 %v2318_v35, %v2299_v40 }
 0x411   : > { %v2339_v38 = vadd.f32 %v2338_v17, %v2319_v5  ;;  %2346 = sbr.rel (%p2769_p1) target bundleno = 1058 (0x422), region = 64 }
 0x413   : > { %v2341_v3 = vadd.f32 %v2339_v38, %v2184_v31 }
 0x415   : > { %2342 = vst [vmem:[#allocation3] sm:$0x3] %v2341_v3 }
 0x416   : > { %v2888_v52 = vld [vmem:[%s4480_s4] ss:$0 sm:$0xff] }
 0x41c   : > { %v2347_v14 = vld [vmem:[#allocation3] sm:$0x3] }
 0x41d   : > { %v2348_v33 = vmul.f32 0.00390625, %v2347_v14 }
 0x41f   : > { %v2353_v53 = vadd.f32 %v2888_v52, %v2348_v33 }
 0x421   : > { %2354 = vst [vmem:[%s3302_s3] sm:$0x3] %v2353_v53 }
 0x422 PF: > { %s2771_s14 = sshll.u32 %s3103_s22, 1  ;;  %s2368_s12 = sshll.u32 %s3302_s3, 4  ;;  %s2369_s12 = int_to_ptr.vmem [resolvable:$true] %s2368_s12 }
 0x423   : > { %s2366_s21 = scalar_lea.hbm %s4481_s5, %s2771_s14  ;;  %s2356_s1 = scalar_lea.sflag [#allocation6], %s3283_s8 }
 0x424   : > { %s2370_s29 = sshll.u32 %s2366_s21, 4  ;;  %s3029_s22 = scalar_lea.hbm %s4481_s5, 4  ;;  %s2371_s29 = int_to_ptr.hbm [resolvable:$true] %s2370_s29 }
 0x425   : > { %s3023_s30 = sshra.s32 %s2371_s29, 4  ;;  %s3024_s30 = int_to_ptr.hbm [resolvable:$true] %s3023_s30 }
 0x426   : > { %s3025_s28 = scalar_lea.hbm %s3024_s30, 2  ;;  %p3030_p12 = scmp.lt.s32.totalorder %s3024_s30, %s4481_s5 }
 0x427   : > { %p3026_p4 = scmp.ne.s32.totalorder %s3024_s30, %s3025_s28  ;;  %p3031_p13 = scmp.lt.s32.totalorder %s3029_s22, %s3025_s28 }
 0x429   : > { %p3027_p10 = pnand %p3026_p4, %p3255_p0  ;;  %p3032_p3 = por %p3031_p13, %p3030_p12 }
 0x42b   : > { %p3028_p11 = pneg %p3027_p10 }
 0x42d   : > { %p3033_p5 = pnand %p3032_p3, %p3028_p11 }
 0x42f   : > { %3036 = shalt.err (!%p3033_p5)
}
 0x430   : > { %2789 = dma.vmem_to_hbm [thread:$0]  (%p3255_p0), %s2369_s12, 32, %s2371_s29, %s2356_s1  }
 0x431 PF: > { %p2816_p7 = scmp.ge.s32.totalorder %s3115_s25, 2  ;;  %s2382_s8 = sand.u32 1, %s3087_s18  }
 0x432   : > { %s2383_s3 = scalar_lea.sflag [#allocation6], %s2382_s8 }
 0x433   : > { %p2806_p9 = pnand %p2816_p7, %p3212_p6 }
 0x435   : > { %p2807_p2 = pneg %p2806_p9 }
 0x437   : > { %3082 = dma.done.wait (%p2807_p2), %s2383_s3, 32  }
 0x438   : > { %3084 = vsyncadd (%p2807_p2), %s2383_s3, 4294967264  ;;  %s23_s25 = sadd.s32 1, %s3115_s25   ;;  %s4513_s15 = sld [smem:[#allocation17_spill]] }
 0x439   : > { %p20_p8 = scmp.ge.s32.totalorder %s23_s25, 10   ;;  %s4514_s18 = smov %s3091_s19 }
 0x43a   : > { %s4515_s19 = smov %s3095_s20  ;;  %s4516_s20 = smov %s3274_s2 }
 0x43b   : > { %s4517_s21 = smov %s3107_s23  ;;  %s4518_s22 = smov %s3111_s24 }
 0x43c   : > { %s4520_s24 = smov %s4526_s9  ;;  %22 = sbr.rel (!%p20_p8) target bundleno = 13 (0xd), region = 111 }
 0x43e   : > { %s4519_s23 = smov %s4513_s15 }
 0x441   :  { %2389 = vsyncpa [#allocation5], 1 }
 0x442   :  { %2391 = vsyncpa [#allocation5 + $0x1], 1 }
 0x443   :  { %2392 = vsyncpa [#allocation8], 1 }
 0x444   :  { %2393 = vsyncpa [#allocation11], 1 }
 0x445   :  { %2394 = vsyncpa [#allocation6], 1 }
 0x446   :  { %2396 = vsyncpa [#allocation6 + $0x1], 1 }

</bundles_post_ra>
